<compile_context>
chip_gen: v5e
topology: v5e:2x2
jax: 0.10.0
libtpu: 0.0.40
codegen_flags: <defaults>
</compile_context>

<pallas_src>
import functools

import jax
import jax.numpy as jnp
from jax.experimental import pallas as pl
from jax.experimental.pallas import tpu as pltpu

LANE = 128  # vreg lane width / MXU-friendly feature width


def _vmem_capacity_bytes():
    """Per-TensorCore VMEM capacity; conservative fallback = 64 MiB (v7x per-TC)."""
    try:
        return int(pltpu.get_tpu_info().vmem_capacity_bytes)
    except Exception:
        return 64 << 20


_VMEM_CAP = _vmem_capacity_bytes()
VMEM_BUDGET = int(_VMEM_CAP * 0.70)   # budget used for tile-size selection
VMEM_LIMIT = int(_VMEM_CAP * 0.90)    # scoped limit handed to Mosaic


def _round_up(x, m):
    return (x + m - 1) // m * m


def _pad2d(a, rows, cols):
    r, c = a.shape
    return jnp.pad(a, ((0, rows - r), (0, cols - c)))


def _pick_row_tile(n, vmem_bytes_fn):
    """Largest row tile whose blocks fit the VMEM budget, keeping >= 2 grid steps so a
    'parallel' row axis actually feeds both TensorCores on v7x. Returns (tm, n_padded)."""
    n8 = _round_up(max(n, 8), 8)
    for tm in (1024, 512, 256, 128, 64, 32, 16, 8):
        n_pad = _round_up(n8, tm)
        if n_pad // tm < 2:          # single grid step would serialize onto one TC
            continue
        if vmem_bytes_fn(tm, n_pad) <= VMEM_BUDGET:
            return tm, n_pad
    # Tiny graphs (or extreme N where even tm=8 with resident XW overflows VMEM; such
    # sizes would need a K/reduction grid axis with a VMEM accumulator — not needed here).
    return 8, n8


# ----------------------------- kernels ------------------------------------------


def _proj_kernel(x_ref, w_ref, o_ref):
    """One row tile of the dense projection: O = X_tile @ W (f32 accumulation)."""
    o_ref[...] = jnp.dot(x_ref[...], w_ref[...],
                         preferred_element_type=jnp.float32).astype(o_ref.dtype)


def _agg_proj_kernel(a_ref, xw_ref, b_ref, w2_ref, o_ref):
    """Fused layer boundary: O = relu(A_tile @ XW + b) @ W2 (h1 never hits HBM)."""
    a = a_ref[...].astype(xw_ref.dtype)   # f32 A streamed, cast on-chip (VPU, hidden under DMA)
    acc = jnp.dot(a, xw_ref[...], preferred_element_type=jnp.float32)
    h = jnp.maximum(acc + b_ref[...], 0.0).astype(w2_ref.dtype)
    o_ref[...] = jnp.dot(h, w2_ref[...],
                         preferred_element_type=jnp.float32).astype(o_ref.dtype)


def _agg_kernel(a_ref, xw_ref, b_ref, o_ref):
    """One row tile of the aggregation: O = relu(A_tile @ XW + b)."""
    a = a_ref[...].astype(xw_ref.dtype)
    acc = jnp.dot(a, xw_ref[...], preferred_element_type=jnp.float32)
    o_ref[...] = jnp.maximum(acc + b_ref[...], 0.0).astype(o_ref.dtype)


# ----------------------------- pallas_call wrappers ------------------------------


def _project(x, w, tm, out_dtype):
    """XW = X @ W, row-tiled over X; W resident in VMEM."""
    n, fin = x.shape
    fout = w.shape[1]
    out_isz = jnp.dtype(out_dtype).itemsize
    flops = 2 * n * fin * fout
    bytes_accessed = (x.size * x.dtype.itemsize + w.size * w.dtype.itemsize
                      + n * fout * out_isz)
    return pl.pallas_call(
        _proj_kernel,
        out_shape=jax.ShapeDtypeStruct((n, fout), out_dtype),
        grid_spec=pltpu.PrefetchScalarGridSpec(
            num_scalar_prefetch=0,
            grid=(n // tm,),
            in_specs=[
                pl.BlockSpec((tm, fin), lambda i: (i, 0)),     # streamed X rows
                pl.BlockSpec((fin, fout), lambda i: (0, 0)),   # resident weights
            ],
            out_specs=pl.BlockSpec((tm, fout), lambda i: (i, 0)),
        ),
        compiler_params=pltpu.CompilerParams(
            dimension_semantics=("parallel",), vmem_limit_bytes=VMEM_LIMIT),
        cost_estimate=pl.CostEstimate(flops=flops, transcendentals=0,
                                      bytes_accessed=bytes_accessed),
    )(x, w)


def _aggregate(a, xw, b, tm, out_dtype, w2=None):
    """relu(A @ XW + b) row-tiled over A (streamed f32, cast in-kernel); XW/bias (and the
    next layer's W2 when fused) are resident in VMEM. With w2, returns relu(...) @ W2."""
    n_pad = a.shape[0]
    f = xw.shape[1]
    fo = f if w2 is None else w2.shape[1]
    out_isz = jnp.dtype(out_dtype).itemsize

    flops = 2 * n_pad * n_pad * f + (0 if w2 is None else 2 * n_pad * f * fo)
    bytes_accessed = (a.size * a.dtype.itemsize + xw.size * xw.dtype.itemsize
                      + b.size * b.dtype.itemsize
                      + (0 if w2 is None else w2.size * w2.dtype.itemsize)
                      + n_pad * fo * out_isz)

    in_specs = [
        pl.BlockSpec((tm, n_pad), lambda i: (i, 0)),   # streamed f32 A row block
        pl.BlockSpec((n_pad, f), lambda i: (0, 0)),    # resident XW (fetched once)
        pl.BlockSpec((1, f), lambda i: (0, 0)),        # resident bias (f32)
    ]
    operands = [a, xw, b]
    kernel = _agg_kernel
    if w2 is not None:
        in_specs.append(pl.BlockSpec((f, fo), lambda i: (0, 0)))   # resident next-layer W
        operands.append(w2)
        kernel = _agg_proj_kernel

    return pl.pallas_call(
        kernel,
        out_shape=jax.ShapeDtypeStruct((n_pad, fo), out_dtype),
        grid_spec=pltpu.PrefetchScalarGridSpec(
            num_scalar_prefetch=0,
            grid=(n_pad // tm,),
            in_specs=in_specs,
            out_specs=pl.BlockSpec((tm, fo), lambda i: (i, 0)),    # lane-dense output
        ),
        compiler_params=pltpu.CompilerParams(
            dimension_semantics=("parallel",), vmem_limit_bytes=VMEM_LIMIT),
        cost_estimate=pl.CostEstimate(flops=flops, transcendentals=0,
                                      bytes_accessed=bytes_accessed),
    )(*operands)


# ----------------------------- forward -------------------------------------------


@functools.partial(jax.jit, static_argnames=("compute_dtype",))
def gcn_forward(a_norm, x, w1, b1, w2, b2, compute_dtype=jnp.bfloat16):
    """2-layer GCN forward. a_norm = D^-1/2 (A + I) D^-1/2 (dense, [N, N], f32)."""
    n, nfeat = x.shape
    nhid1 = w1.shape[1]
    nhid2 = w2.shape[1]

    f_in = _round_up(nfeat, LANE)
    f_h1 = _round_up(nhid1, LANE)
    f_h2 = _round_up(nhid2, LANE)

    # Row tile + padded node count, sized against the VMEM-dominant aggregation calls.
    # Residents counted double-buffered (BlockSpec default) to stay conservative.
    def _agg_vmem_bytes(tm, n_pad):
        a_blk = 2 * tm * n_pad * 4                                      # streamed f32 A rows
        out_blk = 2 * tm * max(f_h1, f_h2) * 4                          # output rows (f32 worst)
        res_l1 = 2 * (n_pad * f_h1 * 2 + f_h1 * 4 + f_h1 * f_h2 * 2)    # XW1 + b1 + W2
        res_l2 = 2 * (n_pad * f_h2 * 2 + f_h2 * 4)                      # HW2 + b2
        return a_blk + out_blk + max(res_l1, res_l2)

    tm, n_pad = _pick_row_tile(n, _agg_vmem_bytes)

    # Lane-dense operands. A stays f32 in HBM (cast to bf16 on-chip); weights/activations
    # feeding the MXU are bf16; biases stay f32 (added post-accumulation). Zero padding
    # is exact: padded A cols/rows and padded W/b entries contribute nothing to the slice
    # returned at the end.
    a_p = _pad2d(a_norm.astype(jnp.float32), n_pad, n_pad)
    x_p = _pad2d(x, n_pad, f_in).astype(compute_dtype)
    w1_p = _pad2d(w1, f_in, f_h1).astype(compute_dtype)
    w2_p = _pad2d(w2, f_h1, f_h2).astype(compute_dtype)
    b1_p = _pad2d(b1.reshape(1, -1), 1, f_h1).astype(jnp.float32)
    b2_p = _pad2d(b2.reshape(1, -1), 1, f_h2).astype(jnp.float32)

    # ---- layer 1 projection: X @ W1 (computed exactly once) ----
    xw1 = _project(x_p, w1_p, tm, compute_dtype)
    # ---- layer 1 aggregation fused with layer 2 projection: relu(A @ XW1 + b1) @ W2 ----
    hw2 = _aggregate(a_p, xw1, b1_p, tm, compute_dtype, w2=w2_p)
    # TODO(synk): F.dropout(p=0.5, training=True) would use pltpu.prng_*; eval mode -> identity.
    # ---- layer 2 aggregation: relu(A @ HW2 + b2), f32 out ----
    h2 = _aggregate(a_p, hw2, b2_p, tm, jnp.float32)

    return h2[:n, :nhid2]


# ----------------------------- demo / correctness --------------------------------


def build_normalized_adjacency(key, n):
    """Random undirected graph + self loops, symmetric 'both' normalization."""
    r = jax.random.uniform(key, (n, n))
    a = (r + r.T > 1.0).astype(jnp.float32)          # symmetric 0/1 adjacency
    a = a * (1.0 - jnp.eye(n)) + jnp.eye(n)          # g = dgl.add_self_loop(g)
    deg = jnp.sum(a, axis=1)
    d_inv_sqrt = 1.0 / jnp.sqrt(deg)
    return a * d_inv_sqrt[:, None] * d_inv_sqrt[None, :]   # D^-1/2 (A+I) D^-1/2


if __name__ == "__main__":
    # Small, module-consistent shapes: N nodes, nfeat -> nhid1 -> nhid2.
    # N=500 is deliberately not a tile multiple: exercises the row-tiled pipeline
    # (TM=256 -> 2 parallel tiles over N padded to 512) and the exact zero-padding path.
    N, NFEAT, NHID1, NHID2 = 500, 16, 32, 16

    key = jax.random.PRNGKey(0)
    k_a, k_x, k_w1, k_b1, k_w2, k_b2 = jax.random.split(key, 6)

    a_norm = build_normalized_adjacency(k_a, N)
    x = jax.random.normal(k_x, (N, NFEAT), dtype=jnp.float32)

    # GraphConv weights (glorot-ish deterministic init) and biases.
    w1 = jax.random.normal(k_w1, (NFEAT, NHID1), dtype=jnp.float32) / jnp.sqrt(NFEAT)
    b1 = jax.random.normal(k_b1, (1, NHID1), dtype=jnp.float32) * 0.01
    w2 = jax.random.normal(k_w2, (NHID1, NHID2), dtype=jnp.float32) / jnp.sqrt(NHID1)
    b2 = jax.random.normal(k_b2, (1, NHID2), dtype=jnp.float32) * 0.01
    # NOTE: self.final_liner (nhid2 -> nclass) is never called in forward(), so omitted.

    out = jax.block_until_ready(gcn_forward(a_norm, x, w1, b1, w2, b2))

    # Reference in plain JAX mirroring the kernel numerics (bf16 MXU inputs, f32 accumulation,
    # bf16 intermediate activations at layer/HBM boundaries).
    bf = jnp.bfloat16
    a_bf = a_norm.astype(bf)
    xw1 = jnp.dot(x.astype(bf), w1.astype(bf), preferred_element_type=jnp.float32).astype(bf)
    h1 = jnp.maximum(jnp.dot(a_bf, xw1, preferred_element_type=jnp.float32) + b1, 0.0).astype(bf)
    hw2 = jnp.dot(h1, w2.astype(bf), preferred_element_type=jnp.float32).astype(bf)
    ref = jnp.maximum(jnp.dot(a_bf, hw2, preferred_element_type=jnp.float32) + b2, 0.0)

    assert out.shape == (N, NHID2)
    assert out.dtype == jnp.float32
    assert jnp.allclose(out, ref, atol=2e-2, rtol=2e-2)

    print("KERNEL_OK")
</pallas_src>

<mosaic_0001>
module attributes {stable_mosaic.version = 11 : i64} {
  func.func @_proj_kernel(%arg0: i32, %arg1: memref<256x128xbf16, #tpu.memory_space<vmem>>, %arg2: memref<128x128xbf16, #tpu.memory_space<vmem>>, %arg3: memref<256x128xbf16, #tpu.memory_space<vmem>>) attributes {dimension_semantics = [#tpu.dimension_semantics<parallel>], iteration_bounds = array<i64: 2>, scalar_prefetch = 0 : i64, scratch_operands = 0 : i64, tpu.core_type = #tpu.core_type<tc>, window_params = [{transform_indices = @transform_0, window_bounds = array<i64: 256, 128>}, {pipeline_mode = #tpu.pipeline_mode<synchronous>, transform_indices = @transform_1, window_bounds = array<i64: 128, 128>}, {transform_indices = @transform_2, window_bounds = array<i64: 256, 128>}]} {
    %c0 = arith.constant 0 : index
    %c0_0 = arith.constant 0 : index
    %0 = vector.load %arg1[%c0, %c0_0] : memref<256x128xbf16, #tpu.memory_space<vmem>>, vector<256x128xbf16>
    %c0_1 = arith.constant 0 : index
    %c0_2 = arith.constant 0 : index
    %1 = vector.load %arg2[%c0_1, %c0_2] : memref<128x128xbf16, #tpu.memory_space<vmem>>, vector<128x128xbf16>
    %cst = arith.constant dense<0.000000e+00> : vector<256x128xf32>
    %2 = tpu.matmul %0, %1, %cst {dimension_numbers = #tpu.dot_dimension_numbers<[1], [0], [0], [1], [0, 0, 1, 1], [], []>} : vector<256x128xbf16>, vector<128x128xbf16>, vector<256x128xf32> -> vector<256x128xf32>
    %3 = arith.truncf %2 : vector<256x128xf32> to vector<256x128xbf16>
    %c0_3 = arith.constant 0 : index
    %c0_4 = arith.constant 0 : index
    %4 = vector.load %arg3[%c0_3, %c0_4] : memref<256x128xbf16, #tpu.memory_space<vmem>>, vector<256x128xbf16>
    tpu.vector_store %arg3[%c0_3, %c0_4], %3 {strides = array<i32>} : memref<256x128xbf16, #tpu.memory_space<vmem>>, vector<256x128xbf16>,
    return
  }
  func.func @transform_0(%arg0: i32) -> (i32, i32) {
    %c0_i32 = arith.constant 0 : i32
    %c0_i32_0 = arith.constant 0 : i32
    return %arg0, %c0_i32 : i32, i32
  }
  func.func @transform_1(%arg0: i32) -> (i32, i32) {
    %c0_i32 = arith.constant 0 : i32
    %c0_i32_0 = arith.constant 0 : i32
    %c0_i32_1 = arith.constant 0 : i32
    return %c0_i32, %c0_i32_0 : i32, i32
  }
  func.func @transform_2(%arg0: i32) -> (i32, i32) {
    %c0_i32 = arith.constant 0 : i32
    %c0_i32_0 = arith.constant 0 : i32
    return %arg0, %c0_i32 : i32, i32
  }
}

module attributes {stable_mosaic.version = 11 : i64} {
  func.func @_agg_kernel(%arg0: i32, %arg1: memref<256x512xf32, #tpu.memory_space<vmem>>, %arg2: memref<512x128xbf16, #tpu.memory_space<vmem>>, %arg3: memref<1x128xf32, #tpu.memory_space<vmem>>, %arg4: memref<256x128xf32, #tpu.memory_space<vmem>>) attributes {dimension_semantics = [#tpu.dimension_semantics<parallel>], iteration_bounds = array<i64: 2>, scalar_prefetch = 0 : i64, scratch_operands = 0 : i64, tpu.core_type = #tpu.core_type<tc>, window_params = [{transform_indices = @transform_0, window_bounds = array<i64: 256, 512>}, {pipeline_mode = #tpu.pipeline_mode<synchronous>, transform_indices = @transform_1, window_bounds = array<i64: 512, 128>}, {pipeline_mode = #tpu.pipeline_mode<synchronous>, transform_indices = @transform_2, window_bounds = array<i64: 1, 128>}, {transform_indices = @transform_3, window_bounds = array<i64: 256, 128>}]} {
    %c0 = arith.constant 0 : index
    %c0_0 = arith.constant 0 : index
    %0 = vector.load %arg1[%c0, %c0_0] : memref<256x512xf32, #tpu.memory_space<vmem>>, vector<256x512xf32>
    %1 = arith.truncf %0 : vector<256x512xf32> to vector<256x512xbf16>
    %c0_1 = arith.constant 0 : index
    %c0_2 = arith.constant 0 : index
    %2 = vector.load %arg2[%c0_1, %c0_2] : memref<512x128xbf16, #tpu.memory_space<vmem>>, vector<512x128xbf16>
    %cst = arith.constant dense<0.000000e+00> : vector<256x128xf32>
    %3 = tpu.matmul %1, %2, %cst {dimension_numbers = #tpu.dot_dimension_numbers<[1], [0], [0], [1], [0, 0, 1, 1], [], []>} : vector<256x512xbf16>, vector<512x128xbf16>, vector<256x128xf32> -> vector<256x128xf32>
    %c0_3 = arith.constant 0 : index
    %c0_4 = arith.constant 0 : index
    %4 = vector.load %arg3[%c0_3, %c0_4] : memref<1x128xf32, #tpu.memory_space<vmem>>, vector<1x128xf32>
    %5 = vector.broadcast %4 : vector<1x128xf32> to vector<256x128xf32>
    %6 = arith.addf %3, %5 : vector<256x128xf32>
    %cst_5 = arith.constant 0.000000e+00 : f32
    %7 = vector.broadcast %cst_5 : f32 to vector<256x128xf32>
    %8 = arith.maximumf %6, %7 : vector<256x128xf32>
    %c0_6 = arith.constant 0 : index
    %c0_7 = arith.constant 0 : index
    %9 = vector.load %arg4[%c0_6, %c0_7] : memref<256x128xf32, #tpu.memory_space<vmem>>, vector<256x128xf32>
    tpu.vector_store %arg4[%c0_6, %c0_7], %8 {strides = array<i32>} : memref<256x128xf32, #tpu.memory_space<vmem>>, vector<256x128xf32>,
    return
  }
  func.func @transform_0(%arg0: i32) -> (i32, i32) {
    %c0_i32 = arith.constant 0 : i32
    %c0_i32_0 = arith.constant 0 : i32
    return %arg0, %c0_i32 : i32, i32
  }
  func.func @transform_1(%arg0: i32) -> (i32, i32) {
    %c0_i32 = arith.constant 0 : i32
    %c0_i32_0 = arith.constant 0 : i32
    %c0_i32_1 = arith.constant 0 : i32
    return %c0_i32, %c0_i32_0 : i32, i32
  }
  func.func @transform_2(%arg0: i32) -> (i32, i32) {
    %c0_i32 = arith.constant 0 : i32
    %c0_i32_0 = arith.constant 0 : i32
    %c0_i32_1 = arith.constant 0 : i32
    return %c0_i32, %c0_i32_0 : i32, i32
  }
  func.func @transform_3(%arg0: i32) -> (i32, i32) {
    %c0_i32 = arith.constant 0 : i32
    %c0_i32_0 = arith.constant 0 : i32
    return %arg0, %c0_i32 : i32, i32
  }
}

module attributes {stable_mosaic.version = 11 : i64} {
  func.func @_agg_proj_kernel(%arg0: i32, %arg1: memref<256x512xf32, #tpu.memory_space<vmem>>, %arg2: memref<512x128xbf16, #tpu.memory_space<vmem>>, %arg3: memref<1x128xf32, #tpu.memory_space<vmem>>, %arg4: memref<128x128xbf16, #tpu.memory_space<vmem>>, %arg5: memref<256x128xbf16, #tpu.memory_space<vmem>>) attributes {dimension_semantics = [#tpu.dimension_semantics<parallel>], iteration_bounds = array<i64: 2>, scalar_prefetch = 0 : i64, scratch_operands = 0 : i64, tpu.core_type = #tpu.core_type<tc>, window_params = [{transform_indices = @transform_0, window_bounds = array<i64: 256, 512>}, {pipeline_mode = #tpu.pipeline_mode<synchronous>, transform_indices = @transform_1, window_bounds = array<i64: 512, 128>}, {pipeline_mode = #tpu.pipeline_mode<synchronous>, transform_indices = @transform_2, window_bounds = array<i64: 1, 128>}, {pipeline_mode = #tpu.pipeline_mode<synchronous>, transform_indices = @transform_3, window_bounds = array<i64: 128, 128>}, {transform_indices = @transform_4, window_bounds = array<i64: 256, 128>}]} {
    %c0 = arith.constant 0 : index
    %c0_0 = arith.constant 0 : index
    %0 = vector.load %arg1[%c0, %c0_0] : memref<256x512xf32, #tpu.memory_space<vmem>>, vector<256x512xf32>
    %1 = arith.truncf %0 : vector<256x512xf32> to vector<256x512xbf16>
    %c0_1 = arith.constant 0 : index
    %c0_2 = arith.constant 0 : index
    %2 = vector.load %arg2[%c0_1, %c0_2] : memref<512x128xbf16, #tpu.memory_space<vmem>>, vector<512x128xbf16>
    %cst = arith.constant dense<0.000000e+00> : vector<256x128xf32>
    %3 = tpu.matmul %1, %2, %cst {dimension_numbers = #tpu.dot_dimension_numbers<[1], [0], [0], [1], [0, 0, 1, 1], [], []>} : vector<256x512xbf16>, vector<512x128xbf16>, vector<256x128xf32> -> vector<256x128xf32>
    %c0_3 = arith.constant 0 : index
    %c0_4 = arith.constant 0 : index
    %4 = vector.load %arg3[%c0_3, %c0_4] : memref<1x128xf32, #tpu.memory_space<vmem>>, vector<1x128xf32>
    %5 = vector.broadcast %4 : vector<1x128xf32> to vector<256x128xf32>
    %6 = arith.addf %3, %5 : vector<256x128xf32>
    %cst_5 = arith.constant 0.000000e+00 : f32
    %7 = vector.broadcast %cst_5 : f32 to vector<256x128xf32>
    %8 = arith.maximumf %6, %7 : vector<256x128xf32>
    %9 = arith.truncf %8 : vector<256x128xf32> to vector<256x128xbf16>
    %c0_6 = arith.constant 0 : index
    %c0_7 = arith.constant 0 : index
    %10 = vector.load %arg4[%c0_6, %c0_7] : memref<128x128xbf16, #tpu.memory_space<vmem>>, vector<128x128xbf16>
    %cst_8 = arith.constant dense<0.000000e+00> : vector<256x128xf32>
    %11 = tpu.matmul %9, %10, %cst_8 {dimension_numbers = #tpu.dot_dimension_numbers<[1], [0], [0], [1], [0, 0, 1, 1], [], []>} : vector<256x128xbf16>, vector<128x128xbf16>, vector<256x128xf32> -> vector<256x128xf32>
    %12 = arith.truncf %11 : vector<256x128xf32> to vector<256x128xbf16>
    %c0_9 = arith.constant 0 : index
    %c0_10 = arith.constant 0 : index
    %13 = vector.load %arg5[%c0_9, %c0_10] : memref<256x128xbf16, #tpu.memory_space<vmem>>, vector<256x128xbf16>
    tpu.vector_store %arg5[%c0_9, %c0_10], %12 {strides = array<i32>} : memref<256x128xbf16, #tpu.memory_space<vmem>>, vector<256x128xbf16>,
    return
  }
  func.func @transform_0(%arg0: i32) -> (i32, i32) {
    %c0_i32 = arith.constant 0 : i32
    %c0_i32_0 = arith.constant 0 : i32
    return %arg0, %c0_i32 : i32, i32
  }
  func.func @transform_1(%arg0: i32) -> (i32, i32) {
    %c0_i32 = arith.constant 0 : i32
    %c0_i32_0 = arith.constant 0 : i32
    %c0_i32_1 = arith.constant 0 : i32
    return %c0_i32, %c0_i32_0 : i32, i32
  }
  func.func @transform_2(%arg0: i32) -> (i32, i32) {
    %c0_i32 = arith.constant 0 : i32
    %c0_i32_0 = arith.constant 0 : i32
    %c0_i32_1 = arith.constant 0 : i32
    return %c0_i32, %c0_i32_0 : i32, i32
  }
  func.func @transform_3(%arg0: i32) -> (i32, i32) {
    %c0_i32 = arith.constant 0 : i32
    %c0_i32_0 = arith.constant 0 : i32
    %c0_i32_1 = arith.constant 0 : i32
    return %c0_i32, %c0_i32_0 : i32, i32
  }
  func.func @transform_4(%arg0: i32) -> (i32, i32) {
    %c0_i32 = arith.constant 0 : i32
    %c0_i32_0 = arith.constant 0 : i32
    return %arg0, %c0_i32 : i32, i32
  }
}

</mosaic_0001>

<bundles_post_ra>
// kernel: gcn_forward.3
= control target key start
LH: loop header
LB: loop body
LE: loop exit
PB: predicated region body
PF: predicated region fallthrough
CT: control target
= control target key end

     0   :  { %s829_s9 = smov 0   ;;  %s913_s0 = inlined_call_operand.vmem [shape: bf16[512,128], index: 0, kind: input, shape index: {}]   ;;  %s914_s1 = inlined_call_operand.vmem [shape: bf16[128,128], index: 1, kind: input, shape index: {}]   ;;  %s915_s2 = inlined_call_operand.vmem [shape: bf16[512,128], index: 2, kind: output, shape index: {}]  }
   0x1 LB: > { %s548_s10 = sadd.s32 4294967295, %s812_s9   ;;  %p552_p0 = scmp.ge.s32.totalorder %s812_s9, 1  ;;  %s812_s9 = sphi %s829_s9, %s12_s9  }
   0x2   : > { %p113_p1 = scmp.lt.s32.totalorder %s812_s9, 3 }
   0x4   : > { %p114_p2 = pnand %p552_p0, %p113_p1 }
   0x5   : > { %s553_s19 = sshll.u32 (!%p114_p2), %s548_s10, 5 }
   0x6   : > { %117 = sbr.rel (%p114_p2) target bundleno = 236 (0xec), region = 28  ;;  %p136_p3 = scmp.lt.s32.totalorder (!%p114_p2), %s553_s19, 63 }
   0xb   : > { %v678_v0 = vld [vmem:[%s914_s1 + $0x38] sm:$0xff]  ;;  %v677_v1 = vld [vmem:[%s914_s1 + $0x30] sm:$0xff]  ;;  %v676_v2 = vld [vmem:[%s914_s1 + $0x28] sm:$0xff]  ;;  %s917_s19 = smov (!%p136_p3, %s553_s19), 63 }
   0xc   : > { %339 = vmatpush.bf16.msra.mxu0 %v678_v0  ;;  %774 = vmatpush.bf16.msra.mxu1 %v678_v0  ;;  %v675_v3 = vld [vmem:[%s914_s1 + $0x20] sm:$0xff]  ;;  %v674_v4 = vld [vmem:[%s914_s1 + $0x18] sm:$0xff]  ;;  %v673_v5 = vld [vmem:[%s914_s1 + $0x10] sm:$0xff]  ;;  %s554_s26 = sshll.u32 %s917_s19, 2 }
   0xd   : > { %775 = vmatpush.bf16.msra.mxu2 %v678_v0  ;;  %776 = vmatpush.bf16.msra.mxu3 %v678_v0  ;;  %v672_v6 = vld [vmem:[%s914_s1 + $0x8] sm:$0xff]  ;;  %v671_v7 = vld [vmem:[%s914_s1] sm:$0xff]  ;;  %s869_s3 = scalar_lea.vmem %s913_s0, %s554_s26  ;;  %s892_s6 = scalar_lea.vmem %s915_s2, %s554_s26 }
   0xe   : > { %v655_v8 = vld [vmem:[%s869_s3] sm:$0xff]  ;;  %v656_v12 = vld [vmem:[%s869_s3 + $0x8] sm:$0xff]  ;;  %v657_v16 = vld [vmem:[%s869_s3 + $0x10] sm:$0xff] }
   0xf   : > { %v659_v9 = vld [vmem:[%s869_s3 + $0x20] sm:$0xff]  ;;  %v660_v13 = vld [vmem:[%s869_s3 + $0x28] sm:$0xff]  ;;  %v661_v17 = vld [vmem:[%s869_s3 + $0x30] sm:$0xff] }
  0x10   : > { %340 = vmatpush.bf16.msra.mxu0 %v677_v1  ;;  %777 = vmatpush.bf16.msra.mxu1 %v677_v1  ;;  %v663_v10 = vld [vmem:[%s869_s3 + $0x40] sm:$0xff]  ;;  %v664_v14 = vld [vmem:[%s869_s3 + $0x48] sm:$0xff]  ;;  %v665_v18 = vld [vmem:[%s869_s3 + $0x50] sm:$0xff] }
  0x11   : > { %778 = vmatpush.bf16.msra.mxu2 %v677_v1  ;;  %779 = vmatpush.bf16.msra.mxu3 %v677_v1  ;;  %v667_v11 = vld [vmem:[%s869_s3 + $0x60] sm:$0xff]  ;;  %v668_v15 = vld [vmem:[%s869_s3 + $0x68] sm:$0xff]  ;;  %v669_v19 = vld [vmem:[%s869_s3 + $0x70] sm:$0xff] }
  0x12   : > { %v658_v20 = vld [vmem:[%s869_s3 + $0x18] sm:$0xff] }
  0x13   : > { %v662_v21 = vld [vmem:[%s869_s3 + $0x38] sm:$0xff] }
  0x14   : > { %341 = vmatpush.bf16.msra.mxu0 %v676_v2  ;;  %780 = vmatpush.bf16.msra.mxu1 %v676_v2  ;;  %v666_v22 = vld [vmem:[%s869_s3 + $0x58] sm:$0xff] }
  0x15   : > { %781 = vmatpush.bf16.msra.mxu2 %v676_v2  ;;  %782 = vmatpush.bf16.msra.mxu3 %v676_v2  ;;  %v670_v23 = vld [vmem:[%s869_s3 + $0x78] sm:$0xff] }
  0x18   : > { %342 = vmatpush.bf16.msra.mxu0 %v675_v3  ;;  %783 = vmatpush.bf16.msra.mxu1 %v675_v3 }
  0x19   : > { %784 = vmatpush.bf16.msra.mxu2 %v675_v3  ;;  %785 = vmatpush.bf16.msra.mxu3 %v675_v3 }
  0x1c   : > { %343 = vmatpush.bf16.msra.mxu0 %v674_v4  ;;  %786 = vmatpush.bf16.msra.mxu1 %v674_v4 }
  0x1d   : > { %787 = vmatpush.bf16.msra.mxu2 %v674_v4  ;;  %788 = vmatpush.bf16.msra.mxu3 %v674_v4 }
  0x20   : > { %344 = vmatpush.bf16.msra.mxu0 %v673_v5  ;;  %789 = vmatpush.bf16.msra.mxu1 %v673_v5 }
  0x21   : > { %790 = vmatpush.bf16.msra.mxu2 %v673_v5  ;;  %791 = vmatpush.bf16.msra.mxu3 %v673_v5 }
  0x24   : > { %345 = vmatpush.bf16.msra.mxu0 %v672_v6  ;;  %792 = vmatpush.bf16.msra.mxu1 %v672_v6 }
  0x25   : > { %793 = vmatpush.bf16.msra.mxu2 %v672_v6  ;;  %794 = vmatpush.bf16.msra.mxu3 %v672_v6 }
  0x28   : > { %346 = vmatpush.bf16.msra.mxu0 %v671_v7  ;;  %795 = vmatpush.bf16.msra.mxu1 %v671_v7 }
  0x29   : > { %796 = vmatpush.bf16.msra.mxu2 %v671_v7  ;;  %797 = vmatpush.bf16.msra.mxu3 %v671_v7 }
  0x2b   : > { %347 = vmatmul.bf16.vlgmr.msra.gmra.mxu0 %v655_v8  ;;  %367 = vmatmul.bf16.vlgmr.msra.gmra.mxu1 %v659_v9 }
  0x2c   : > { %387 = vmatmul.bf16.vlgmr.msra.gmra.mxu2 %v663_v10  ;;  %407 = vmatmul.bf16.vlgmr.msra.gmra.mxu3 %v667_v11 }
  0x3b   : > { %352 = vmatmul.bf16.gmra.mxu0 %v656_v12  ;;  %372 = vmatmul.bf16.gmra.mxu1 %v660_v13 }
  0x3c   : > { %392 = vmatmul.bf16.gmra.mxu2 %v664_v14  ;;  %412 = vmatmul.bf16.gmra.mxu3 %v668_v15 }
  0x4b   : > { %357 = vmatmul.bf16.gmra.mxu0 %v657_v16  ;;  %377 = vmatmul.bf16.gmra.mxu1 %v661_v17 }
  0x4c   : > { %397 = vmatmul.bf16.gmra.mxu2 %v665_v18  ;;  %417 = vmatmul.bf16.gmra.mxu3 %v669_v19 }
  0x5b   : > { %362 = vmatmul.bf16.gmra.mxu0 %v658_v20  ;;  %382 = vmatmul.bf16.gmra.mxu1 %v662_v21 }
  0x5c   : > { %402 = vmatmul.bf16.gmra.mxu2 %v666_v22  ;;  %422 = vmatmul.bf16.gmra.mxu3 %v670_v23 }
  0xa8   : > { %v348_v24 = vpop.f32.mrf.mxu0  ;;  %v368_v25 = vpop.f32.mrf.mxu1 }
  0xaf   : > { %v388_v26 = vpop.f32.mrf.mxu2  ;;  %v408_v27 = vpop.f32.mrf.mxu3 }
  0xb0   : > { %v350_v28 = vpop.f32.mrf.mxu0  ;;  %v370_v29 = vpop.f32.mrf.mxu1 }
  0xb1   : > { %v682_v30 = vpack.c.bf16 %v350_v28, %v348_v24  ;;  %v702_v31 = vpack.c.bf16 %v370_v29, %v368_v25 }
  0xb3   : > { %683 = vst [vmem:[%s892_s6] sm:$0xff] %v682_v30  }
  0xb4   : > { %762 = vst [vmem:[%s892_s6 + $0x20] sm:$0xff] %v702_v31  }
  0xb7   : > { %v390_v32 = vpop.f32.mrf.mxu2  ;;  %v410_v33 = vpop.f32.mrf.mxu3 }
  0xb8   : > { %v722_v34 = vpack.c.bf16 %v390_v32, %v388_v26  ;;  %v742_v35 = vpack.c.bf16 %v410_v33, %v408_v27  ;;  %v353_v36 = vpop.f32.mrf.mxu0  ;;  %v373_v37 = vpop.f32.mrf.mxu1 }
  0xba   : > { %766 = vst [vmem:[%s892_s6 + $0x40] sm:$0xff] %v722_v34  }
  0xbb   : > { %770 = vst [vmem:[%s892_s6 + $0x60] sm:$0xff] %v742_v35  }
  0xbf   : > { %v393_v38 = vpop.f32.mrf.mxu2  ;;  %v413_v39 = vpop.f32.mrf.mxu3 }
  0xc0   : > { %v355_v40 = vpop.f32.mrf.mxu0  ;;  %v375_v41 = vpop.f32.mrf.mxu1 }
  0xc1   : > { %v687_v42 = vpack.c.bf16 %v355_v40, %v353_v36  ;;  %v707_v43 = vpack.c.bf16 %v375_v41, %v373_v37 }
  0xc3   : > { %759 = vst [vmem:[%s892_s6 + $0x8] sm:$0xff] %v687_v42  }
  0xc4   : > { %763 = vst [vmem:[%s892_s6 + $0x28] sm:$0xff] %v707_v43  }
  0xc7   : > { %v395_v44 = vpop.f32.mrf.mxu2  ;;  %v415_v45 = vpop.f32.mrf.mxu3 }
  0xc8   : > { %v727_v46 = vpack.c.bf16 %v395_v44, %v393_v38  ;;  %v747_v47 = vpack.c.bf16 %v415_v45, %v413_v39  ;;  %v358_v48 = vpop.f32.mrf.mxu0  ;;  %v378_v49 = vpop.f32.mrf.mxu1 }
  0xca   : > { %767 = vst [vmem:[%s892_s6 + $0x48] sm:$0xff] %v727_v46  }
  0xcb   : > { %771 = vst [vmem:[%s892_s6 + $0x68] sm:$0xff] %v747_v47  }
  0xcf   : > { %v398_v50 = vpop.f32.mrf.mxu2  ;;  %v418_v51 = vpop.f32.mrf.mxu3 }
  0xd0   : > { %v360_v52 = vpop.f32.mrf.mxu0  ;;  %v380_v53 = vpop.f32.mrf.mxu1 }
  0xd1   : > { %v692_v54 = vpack.c.bf16 %v360_v52, %v358_v48  ;;  %v712_v55 = vpack.c.bf16 %v380_v53, %v378_v49 }
  0xd3   : > { %760 = vst [vmem:[%s892_s6 + $0x10] sm:$0xff] %v692_v54  }
  0xd4   : > { %764 = vst [vmem:[%s892_s6 + $0x30] sm:$0xff] %v712_v55  }
  0xd7   : > { %v400_v56 = vpop.f32.mrf.mxu2  ;;  %v420_v57 = vpop.f32.mrf.mxu3 }
  0xd8   : > { %v732_v58 = vpack.c.bf16 %v400_v56, %v398_v50  ;;  %v752_v59 = vpack.c.bf16 %v420_v57, %v418_v51  ;;  %v363_v60 = vpop.f32.mrf.mxu0  ;;  %v383_v61 = vpop.f32.mrf.mxu1 }
  0xda   : > { %768 = vst [vmem:[%s892_s6 + $0x50] sm:$0xff] %v732_v58  }
  0xdb   : > { %772 = vst [vmem:[%s892_s6 + $0x70] sm:$0xff] %v752_v59  }
  0xdf   : > { %v403_v62 = vpop.f32.mrf.mxu2  ;;  %v423_v63 = vpop.f32.mrf.mxu3 }
  0xe0   : > { %v365_v0 = vpop.f32.mrf.mxu0  ;;  %v385_v1 = vpop.f32.mrf.mxu1 }
  0xe1   : > { %v697_v2 = vpack.c.bf16 %v365_v0, %v363_v60  ;;  %v717_v3 = vpack.c.bf16 %v385_v1, %v383_v61 }
  0xe3   : > { %761 = vst [vmem:[%s892_s6 + $0x18] sm:$0xff] %v697_v2  }
  0xe4   : > { %765 = vst [vmem:[%s892_s6 + $0x38] sm:$0xff] %v717_v3  }
  0xe7   : > { %v405_v4 = vpop.f32.mrf.mxu2  ;;  %v425_v5 = vpop.f32.mrf.mxu3 }
  0xe8   : > { %v737_v6 = vpack.c.bf16 %v405_v4, %v403_v62  ;;  %v757_v7 = vpack.c.bf16 %v425_v5, %v423_v63 }
  0xea   : > { %769 = vst [vmem:[%s892_s6 + $0x58] sm:$0xff] %v737_v6  }
  0xeb   : > { %773 = vst [vmem:[%s892_s6 + $0x78] sm:$0xff] %v757_v7  }
  0xec PF: > { %s12_s9 = sadd.s32 1, %s812_s9  }
  0xed   : > { %p9_p4 = scmp.ge.s32.totalorder %s12_s9, 4  }
  0xef   :  { %11 = sbr.rel (!%p9_p4) target bundleno = 1 (0x1), region = 58 }

// kernel: gcn_forward.5
= control target key start
LH: loop header
LB: loop body
LE: loop exit
PB: predicated region body
PF: predicated region fallthrough
CT: control target
= control target key end

     0   :  { %s1315_s12 = smov 0   ;;  %s1633_s0 = inlined_call_operand.vmem [shape: f32[512,512], index: 0, kind: input, shape index: {}]   ;;  %s1634_s1 = inlined_call_operand.vmem [shape: bf16[512,128], index: 1, kind: input, shape index: {}]   ;;  %s1635_s2 = inlined_call_operand.vmem [shape: f32[1,128], index: 2, kind: input, shape index: {}]   ;;  %s1636_s3 = inlined_call_operand.vmem [shape: f32[512,128], index: 3, kind: output, shape index: {}]  }
   0x1 LB: > { %s1105_s13 = sadd.s32 4294967295, %s1293_s12   ;;  %p1109_p0 = scmp.ge.s32.totalorder %s1293_s12, 1  ;;  %s1293_s12 = sphi %s1315_s12, %s13_s12  }
   0x2   : > { %p139_p1 = scmp.lt.s32.totalorder %s1293_s12, 3 }
   0x4   : > { %p140_p2 = pnand %p1109_p0, %p139_p1 }
   0x5   : > { %s1110_s11 = sshll.u32 (!%p140_p2), %s1105_s13, 5 }
   0x6   : > { %143 = sbr.rel (%p140_p2) target bundleno = 432 (0x1b0), region = 32  ;;  %p165_p3 = scmp.lt.s32.totalorder (!%p140_p2), %s1110_s11, 63 }
   0xb   : > { %v1253_v0 = vld [vmem:[%s1634_s1 + $0x38] sm:$0xff]  ;;  %v1252_v4 = vld [vmem:[%s1634_s1 + $0x30] sm:$0xff]  ;;  %v1251_v8 = vld [vmem:[%s1634_s1 + $0x28] sm:$0xff]  ;;  %s1638_s11 = smov (!%p165_p3, %s1110_s11), 63 }
   0xc   : > { %v1261_v1 = vld [vmem:[%s1634_s1 + $0x78] sm:$0xff]  ;;  %629 = vmatpush.bf16.msra.mxu0 %v1253_v0  ;;  %v1260_v5 = vld [vmem:[%s1634_s1 + $0x70] sm:$0xff]  ;;  %v1259_v9 = vld [vmem:[%s1634_s1 + $0x68] sm:$0xff]  ;;  %s1245_s10 = sshll.u32 %s1638_s11, 5  ;;  %s1114_s7 = sshll.u32 %s1638_s11, 3 }
   0xd   : > { %v1269_v2 = vld [vmem:[%s1634_s1 + $0xb8] sm:$0xff]  ;;  %718 = vmatpush.bf16.msra.mxu1 %v1261_v1  ;;  %v1268_v6 = vld [vmem:[%s1634_s1 + $0xb0] sm:$0xff]  ;;  %v1267_v10 = vld [vmem:[%s1634_s1 + $0xa8] sm:$0xff]  ;;  %s1407_s20 = scalar_lea.vmem %s1633_s0, %s1245_s10  ;;  %s1510_s10 = scalar_lea.vmem %s1636_s3, %s1114_s7 }
   0xe   : > { %v1277_v3 = vld [vmem:[%s1634_s1 + $0xf8] sm:$0xff]  ;;  %807 = vmatpush.bf16.msra.mxu2 %v1269_v2  ;;  %v1276_v7 = vld [vmem:[%s1634_s1 + $0xf0] sm:$0xff]  ;;  %v1275_v11 = vld [vmem:[%s1634_s1 + $0xe8] sm:$0xff] }
   0xf   : > { %896 = vmatpush.bf16.msra.mxu3 %v1277_v3  ;;  %v1250_v12 = vld [vmem:[%s1634_s1 + $0x20] sm:$0xff]  ;;  %v1249_v16 = vld [vmem:[%s1634_s1 + $0x18] sm:$0xff]  ;;  %v1248_v20 = vld [vmem:[%s1634_s1 + $0x10] sm:$0xff] }
  0x10   : > { %630 = vmatpush.bf16.msra.mxu0 %v1252_v4  ;;  %v1258_v13 = vld [vmem:[%s1634_s1 + $0x60] sm:$0xff]  ;;  %v1257_v17 = vld [vmem:[%s1634_s1 + $0x58] sm:$0xff]  ;;  %v1256_v21 = vld [vmem:[%s1634_s1 + $0x50] sm:$0xff] }
  0x11   : > { %719 = vmatpush.bf16.msra.mxu1 %v1260_v5  ;;  %v1266_v14 = vld [vmem:[%s1634_s1 + $0xa0] sm:$0xff]  ;;  %v1265_v18 = vld [vmem:[%s1634_s1 + $0x98] sm:$0xff]  ;;  %v1264_v22 = vld [vmem:[%s1634_s1 + $0x90] sm:$0xff] }
  0x12   : > { %808 = vmatpush.bf16.msra.mxu2 %v1268_v6  ;;  %v1274_v15 = vld [vmem:[%s1634_s1 + $0xe0] sm:$0xff]  ;;  %v1273_v19 = vld [vmem:[%s1634_s1 + $0xd8] sm:$0xff]  ;;  %v1272_v23 = vld [vmem:[%s1634_s1 + $0xd0] sm:$0xff] }
  0x13   : > { %897 = vmatpush.bf16.msra.mxu3 %v1276_v7  ;;  %v1247_v24 = vld [vmem:[%s1634_s1 + $0x8] sm:$0xff]  ;;  %v1246_v28 = vld [vmem:[%s1634_s1] sm:$0xff]  ;;  %v179_v36 = vld [vmem:[%s1407_s20 + $0x10] sm:$0xff] }
  0x14   : > { %631 = vmatpush.bf16.msra.mxu0 %v1251_v8  ;;  %v1255_v25 = vld [vmem:[%s1634_s1 + $0x48] sm:$0xff]  ;;  %v1254_v29 = vld [vmem:[%s1634_s1 + $0x40] sm:$0xff]  ;;  %v183_v37 = vld [vmem:[%s1407_s20 + $0x30] sm:$0xff] }
  0x15   : > { %720 = vmatpush.bf16.msra.mxu1 %v1259_v9  ;;  %v1263_v26 = vld [vmem:[%s1634_s1 + $0x88] sm:$0xff]  ;;  %v1262_v30 = vld [vmem:[%s1634_s1 + $0x80] sm:$0xff]  ;;  %v180_v38 = vld [vmem:[%s1407_s20 + $0x18] sm:$0xff]  ;;  %v307_v42 = vpack.c.bf16 %v183_v37, %v179_v36 }
  0x16   : > { %809 = vmatpush.bf16.msra.mxu2 %v1267_v10  ;;  %v1271_v27 = vld [vmem:[%s1634_s1 + $0xc8] sm:$0xff]  ;;  %v1270_v31 = vld [vmem:[%s1634_s1 + $0xc0] sm:$0xff]  ;;  %v184_v39 = vld [vmem:[%s1407_s20 + $0x38] sm:$0xff] }
  0x17   : > { %898 = vmatpush.bf16.msra.mxu3 %v1275_v11  ;;  %v177_v32 = vld [vmem:[%s1407_s20] sm:$0xff]  ;;  %v178_v34 = vld [vmem:[%s1407_s20 + $0x8] sm:$0xff]  ;;  %v308_v43 = vpack.c.bf16 %v184_v39, %v180_v38  ;;  %v187_v48 = vld [vmem:[%s1407_s20 + $0x50] sm:$0xff] }
  0x18   : > { %632 = vmatpush.bf16.msra.mxu0 %v1250_v12  ;;  %v181_v33 = vld [vmem:[%s1407_s20 + $0x20] sm:$0xff]  ;;  %v182_v35 = vld [vmem:[%s1407_s20 + $0x28] sm:$0xff]  ;;  %v191_v49 = vld [vmem:[%s1407_s20 + $0x70] sm:$0xff] }
  0x19   : > { %721 = vmatpush.bf16.msra.mxu1 %v1258_v13  ;;  %v305_v40 = vpack.c.bf16 %v181_v33, %v177_v32  ;;  %v306_v41 = vpack.c.bf16 %v182_v35, %v178_v34  ;;  %v185_v44 = vld [vmem:[%s1407_s20 + $0x40] sm:$0xff]  ;;  %v186_v46 = vld [vmem:[%s1407_s20 + $0x48] sm:$0xff]  ;;  %v188_v50 = vld [vmem:[%s1407_s20 + $0x58] sm:$0xff]  ;;  %v311_v54 = vpack.c.bf16 %v191_v49, %v187_v48 }
  0x1a   : > { %810 = vmatpush.bf16.msra.mxu2 %v1266_v14  ;;  %v189_v45 = vld [vmem:[%s1407_s20 + $0x60] sm:$0xff]  ;;  %v190_v47 = vld [vmem:[%s1407_s20 + $0x68] sm:$0xff]  ;;  %v192_v51 = vld [vmem:[%s1407_s20 + $0x78] sm:$0xff] }
  0x1b   : > { %899 = vmatpush.bf16.msra.mxu3 %v1274_v15  ;;  %v309_v52 = vpack.c.bf16 %v189_v45, %v185_v44  ;;  %v310_v53 = vpack.c.bf16 %v190_v47, %v186_v46  ;;  %v312_v55 = vpack.c.bf16 %v192_v51, %v188_v50  ;;  %v193_v56 = vld [vmem:[%s1407_s20 + $0x80] sm:$0xff]  ;;  %v194_v58 = vld [vmem:[%s1407_s20 + $0x88] sm:$0xff]  ;;  %v195_v60 = vld [vmem:[%s1407_s20 + $0x90] sm:$0xff] }
  0x1c   : > { %633 = vmatpush.bf16.msra.mxu0 %v1249_v16  ;;  %v197_v57 = vld [vmem:[%s1407_s20 + $0xa0] sm:$0xff]  ;;  %v198_v59 = vld [vmem:[%s1407_s20 + $0xa8] sm:$0xff]  ;;  %v199_v61 = vld [vmem:[%s1407_s20 + $0xb0] sm:$0xff] }
  0x1d   : > { %722 = vmatpush.bf16.msra.mxu1 %v1257_v17  ;;  %v196_v62 = vld [vmem:[%s1407_s20 + $0x98] sm:$0xff]  ;;  %v313_v0 = vpack.c.bf16 %v197_v57, %v193_v56  ;;  %v314_v1 = vpack.c.bf16 %v198_v59, %v194_v58  ;;  %v315_v2 = vpack.c.bf16 %v199_v61, %v195_v60  ;;  %v201_v4 = vld [vmem:[%s1407_s20 + $0xc0] sm:$0xff]  ;;  %v202_v6 = vld [vmem:[%s1407_s20 + $0xc8] sm:$0xff] }
  0x1e   : > { %811 = vmatpush.bf16.msra.mxu2 %v1265_v18  ;;  %v200_v63 = vld [vmem:[%s1407_s20 + $0xb8] sm:$0xff]  ;;  %v205_v5 = vld [vmem:[%s1407_s20 + $0xe0] sm:$0xff]  ;;  %v206_v7 = vld [vmem:[%s1407_s20 + $0xe8] sm:$0xff] }
  0x1f   : > { %900 = vmatpush.bf16.msra.mxu3 %v1273_v19  ;;  %v316_v3 = vpack.c.bf16 %v200_v63, %v196_v62  ;;  %v203_v8 = vld [vmem:[%s1407_s20 + $0xd0] sm:$0xff]  ;;  %v204_v10 = vld [vmem:[%s1407_s20 + $0xd8] sm:$0xff]  ;;  %v317_v12 = vpack.c.bf16 %v205_v5, %v201_v4  ;;  %v318_v13 = vpack.c.bf16 %v206_v7, %v202_v6  ;;  %v209_v16 = vld [vmem:[%s1407_s20 + $0x100] sm:$0xff] }
  0x20   : > { %634 = vmatpush.bf16.msra.mxu0 %v1248_v20  ;;  %v207_v9 = vld [vmem:[%s1407_s20 + $0xf0] sm:$0xff]  ;;  %v208_v11 = vld [vmem:[%s1407_s20 + $0xf8] sm:$0xff]  ;;  %v213_v17 = vld [vmem:[%s1407_s20 + $0x120] sm:$0xff] }
  0x21   : > { %723 = vmatpush.bf16.msra.mxu1 %v1256_v21  ;;  %v319_v14 = vpack.c.bf16 %v207_v9, %v203_v8  ;;  %v320_v15 = vpack.c.bf16 %v208_v11, %v204_v10  ;;  %v210_v18 = vld [vmem:[%s1407_s20 + $0x108] sm:$0xff]  ;;  %v211_v20 = vld [vmem:[%s1407_s20 + $0x110] sm:$0xff]  ;;  %v220_v34 = vld [vmem:[%s1407_s20 + $0x158] sm:$0xff] }
  0x22   : > { %812 = vmatpush.bf16.msra.mxu2 %v1264_v22  ;;  %v214_v19 = vld [vmem:[%s1407_s20 + $0x128] sm:$0xff]  ;;  %v215_v21 = vld [vmem:[%s1407_s20 + $0x130] sm:$0xff]  ;;  %v212_v22 = vld [vmem:[%s1407_s20 + $0x118] sm:$0xff] }
  0x23   : > { %901 = vmatpush.bf16.msra.mxu3 %v1272_v23  ;;  %v216_v23 = vld [vmem:[%s1407_s20 + $0x138] sm:$0xff]  ;;  %v219_v32 = vld [vmem:[%s1407_s20 + $0x150] sm:$0xff]  ;;  %v246_v4 = vld [vmem:[%s1407_s20 + $0x228] sm:$0xff] }
  0x24   : > { %635 = vmatpush.bf16.msra.mxu0 %v1247_v24  ;;  %v321_v24 = vpack.c.bf16 %v213_v17, %v209_v16  ;;  %v223_v33 = vld [vmem:[%s1407_s20 + $0x170] sm:$0xff]  ;;  %v224_v35 = vld [vmem:[%s1407_s20 + $0x178] sm:$0xff] }
  0x25   : > { %724 = vmatpush.bf16.msra.mxu1 %v1255_v25  ;;  %v322_v25 = vpack.c.bf16 %v214_v19, %v210_v18  ;;  %v327_v38 = vpack.c.bf16 %v223_v33, %v219_v32  ;;  %v328_v39 = vpack.c.bf16 %v224_v35, %v220_v34  ;;  %v227_v44 = vld [vmem:[%s1407_s20 + $0x190] sm:$0xff]  ;;  %v228_v46 = vld [vmem:[%s1407_s20 + $0x198] sm:$0xff] }
  0x26   : > { %813 = vmatpush.bf16.msra.mxu2 %v1263_v26  ;;  %v323_v26 = vpack.c.bf16 %v215_v21, %v211_v20  ;;  %v231_v45 = vld [vmem:[%s1407_s20 + $0x1b0] sm:$0xff]  ;;  %v232_v47 = vld [vmem:[%s1407_s20 + $0x1b8] sm:$0xff] }
  0x27   : > { %902 = vmatpush.bf16.msra.mxu3 %v1271_v27  ;;  %v324_v27 = vpack.c.bf16 %v216_v23, %v212_v22  ;;  %v331_v50 = vpack.c.bf16 %v231_v45, %v227_v44  ;;  %v332_v51 = vpack.c.bf16 %v232_v47, %v228_v46  ;;  %v235_v56 = vld [vmem:[%s1407_s20 + $0x1d0] sm:$0xff]  ;;  %v236_v58 = vld [vmem:[%s1407_s20 + $0x1d8] sm:$0xff] }
  0x28   : > { %636 = vmatpush.bf16.msra.mxu0 %v1246_v28  ;;  %v217_v28 = vld [vmem:[%s1407_s20 + $0x140] sm:$0xff]  ;;  %v239_v57 = vld [vmem:[%s1407_s20 + $0x1f0] sm:$0xff]  ;;  %v240_v59 = vld [vmem:[%s1407_s20 + $0x1f8] sm:$0xff] }
  0x29   : > { %725 = vmatpush.bf16.msra.mxu1 %v1254_v29  ;;  %v221_v29 = vld [vmem:[%s1407_s20 + $0x160] sm:$0xff]  ;;  %v335_v62 = vpack.c.bf16 %v239_v57, %v235_v56  ;;  %v336_v63 = vpack.c.bf16 %v240_v59, %v236_v58  ;;  %v243_v5 = vld [vmem:[%s1407_s20 + $0x210] sm:$0xff]  ;;  %v244_v7 = vld [vmem:[%s1407_s20 + $0x218] sm:$0xff] }
  0x2a   : > { %814 = vmatpush.bf16.msra.mxu2 %v1262_v30  ;;  %v218_v30 = vld [vmem:[%s1407_s20 + $0x148] sm:$0xff]  ;;  %v325_v36 = vpack.c.bf16 %v221_v29, %v217_v28  ;;  %v247_v6 = vld [vmem:[%s1407_s20 + $0x230] sm:$0xff]  ;;  %v248_v8 = vld [vmem:[%s1407_s20 + $0x238] sm:$0xff] }
  0x2b   : > { %903 = vmatpush.bf16.msra.mxu3 %v1270_v31  ;;  %637 = vmatmul.bf16.vlgmr.msra.gmra.mxu0 %v305_v40  ;;  %v222_v31 = vld [vmem:[%s1407_s20 + $0x168] sm:$0xff]  ;;  %v225_v40 = vld [vmem:[%s1407_s20 + $0x180] sm:$0xff]  ;;  %v251_v29 = vld [vmem:[%s1407_s20 + $0x250] sm:$0xff] }
  0x2c   : > { %726 = vmatmul.bf16.vlgmr.msra.gmra.mxu1 %v306_v41  ;;  %v326_v37 = vpack.c.bf16 %v222_v31, %v218_v30  ;;  %v229_v41 = vld [vmem:[%s1407_s20 + $0x1a0] sm:$0xff]  ;;  %v254_v28 = vld [vmem:[%s1407_s20 + $0x268] sm:$0xff]  ;;  %v255_v30 = vld [vmem:[%s1407_s20 + $0x270] sm:$0xff] }
  0x2d   : > { %815 = vmatmul.bf16.vlgmr.msra.gmra.mxu2 %v307_v42  ;;  %v226_v42 = vld [vmem:[%s1407_s20 + $0x188] sm:$0xff]  ;;  %v329_v48 = vpack.c.bf16 %v229_v41, %v225_v40  ;;  %v252_v31 = vld [vmem:[%s1407_s20 + $0x258] sm:$0xff]  ;;  %v343_v41 = vpack.c.bf16 %v255_v30, %v251_v29  ;;  %v259_v59 = vld [vmem:[%s1407_s20 + $0x290] sm:$0xff] }
  0x2e   : > { %904 = vmatmul.bf16.vlgmr.msra.gmra.mxu3 %v308_v43  ;;  %v230_v43 = vld [vmem:[%s1407_s20 + $0x1a8] sm:$0xff]  ;;  %v256_v32 = vld [vmem:[%s1407_s20 + $0x278] sm:$0xff] }
  0x2f   : > { %v330_v49 = vpack.c.bf16 %v230_v43, %v226_v42  ;;  %v344_v42 = vpack.c.bf16 %v256_v32, %v252_v31  ;;  %v258_v57 = vld [vmem:[%s1407_s20 + $0x288] sm:$0xff]  ;;  %v272_v29 = vld [vmem:[%s1407_s20 + $0x2f8] sm:$0xff] }
  0x30   : > { %v262_v58 = vld [vmem:[%s1407_s20 + $0x2a8] sm:$0xff] }
  0x3b   : > { %642 = vmatmul.bf16.gmra.mxu0 %v309_v52  ;;  %v233_v52 = vld [vmem:[%s1407_s20 + $0x1c0] sm:$0xff] }
  0x3c   : > { %731 = vmatmul.bf16.gmra.mxu1 %v310_v53  ;;  %v237_v53 = vld [vmem:[%s1407_s20 + $0x1e0] sm:$0xff] }
  0x3d   : > { %820 = vmatmul.bf16.gmra.mxu2 %v311_v54  ;;  %v234_v54 = vld [vmem:[%s1407_s20 + $0x1c8] sm:$0xff]  ;;  %v333_v60 = vpack.c.bf16 %v237_v53, %v233_v52 }
  0x3e   : > { %909 = vmatmul.bf16.gmra.mxu3 %v312_v55  ;;  %v238_v55 = vld [vmem:[%s1407_s20 + $0x1e8] sm:$0xff] }
  0x3f   : > { %v334_v61 = vpack.c.bf16 %v238_v55, %v234_v54  ;;  %v257_v54 = vld [vmem:[%s1407_s20 + $0x280] sm:$0xff] }
  0x40   : > { %v261_v55 = vld [vmem:[%s1407_s20 + $0x2a0] sm:$0xff] }
  0x4b   : > { %647 = vmatmul.bf16.gmra.mxu0 %v313_v0  ;;  %v1494_v0 = vld [vmem:[%s1635_s2] ss:$0 sm:$0xff] }
  0x4c   : > { %736 = vmatmul.bf16.gmra.mxu1 %v314_v1  ;;  %v241_v1 = vld [vmem:[%s1407_s20 + $0x200] sm:$0xff] }
  0x4d   : > { %825 = vmatmul.bf16.gmra.mxu2 %v315_v2  ;;  %v245_v2 = vld [vmem:[%s1407_s20 + $0x220] sm:$0xff] }
  0x4e   : > { %914 = vmatmul.bf16.gmra.mxu3 %v316_v3  ;;  %v242_v3 = vld [vmem:[%s1407_s20 + $0x208] sm:$0xff]  ;;  %v337_v9 = vpack.c.bf16 %v245_v2, %v241_v1 }
  0x4f   : > { %v338_v10 = vpack.c.bf16 %v246_v4, %v242_v3  ;;  %v345_v3 = vpack.c.bf16 %v261_v55, %v257_v54  ;;  %v346_v4 = vpack.c.bf16 %v262_v58, %v258_v57  ;;  %v274_v54 = vld [vmem:[%s1407_s20 + $0x308] sm:$0xff]  ;;  %v279_v57 = vld [vmem:[%s1407_s20 + $0x330] sm:$0xff]  ;;  %v276_v58 = vld [vmem:[%s1407_s20 + $0x318] sm:$0xff] }
  0x50   : > { %v278_v55 = vld [vmem:[%s1407_s20 + $0x328] sm:$0xff] }
  0x5b   : > { %652 = vmatmul.bf16.gmra.mxu0 %v317_v12 }
  0x5c   : > { %741 = vmatmul.bf16.gmra.mxu1 %v318_v13  ;;  %v339_v13 = vpack.c.bf16 %v247_v6, %v243_v5 }
  0x5d   : > { %830 = vmatmul.bf16.gmra.mxu2 %v319_v14  ;;  %v340_v14 = vpack.c.bf16 %v248_v8, %v244_v7 }
  0x5e   : > { %919 = vmatmul.bf16.gmra.mxu3 %v320_v15 }
  0x6b   : > { %657 = vmatmul.bf16.gmra.mxu0 %v321_v24  ;;  %v249_v24 = vld [vmem:[%s1407_s20 + $0x240] sm:$0xff] }
  0x6c   : > { %746 = vmatmul.bf16.gmra.mxu1 %v322_v25  ;;  %v253_v25 = vld [vmem:[%s1407_s20 + $0x260] sm:$0xff] }
  0x6d   : > { %835 = vmatmul.bf16.gmra.mxu2 %v323_v26 }
  0x6e   : > { %924 = vmatmul.bf16.gmra.mxu3 %v324_v27  ;;  %v250_v27 = vld [vmem:[%s1407_s20 + $0x248] sm:$0xff] }
  0x7b   : > { %662 = vmatmul.bf16.gmra.mxu0 %v325_v36  ;;  %v341_v36 = vpack.c.bf16 %v253_v25, %v249_v24  ;;  %v266_v24 = vld [vmem:[%s1407_s20 + $0x2c8] sm:$0xff] }
  0x7c   : > { %751 = vmatmul.bf16.gmra.mxu1 %v326_v37  ;;  %v342_v37 = vpack.c.bf16 %v254_v28, %v250_v27  ;;  %v270_v25 = vld [vmem:[%s1407_s20 + $0x2e8] sm:$0xff]  ;;  %v271_v27 = vld [vmem:[%s1407_s20 + $0x2f0] sm:$0xff]  ;;  %v268_v28 = vld [vmem:[%s1407_s20 + $0x2d8] sm:$0xff] }
  0x7d   : > { %840 = vmatmul.bf16.gmra.mxu2 %v327_v38 }
  0x7e   : > { %929 = vmatmul.bf16.gmra.mxu3 %v328_v39 }
  0x8b   : > { %667 = vmatmul.bf16.gmra.mxu0 %v329_v48 }
  0x8c   : > { %756 = vmatmul.bf16.gmra.mxu1 %v330_v49 }
  0x8d   : > { %845 = vmatmul.bf16.gmra.mxu2 %v331_v50 }
  0x8e   : > { %934 = vmatmul.bf16.gmra.mxu3 %v332_v51 }
  0x9b   : > { %672 = vmatmul.bf16.gmra.mxu0 %v333_v60  ;;  %v263_v60 = vld [vmem:[%s1407_s20 + $0x2b0] sm:$0xff] }
  0x9c   : > { %761 = vmatmul.bf16.gmra.mxu1 %v334_v61  ;;  %v260_v61 = vld [vmem:[%s1407_s20 + $0x298] sm:$0xff]  ;;  %v347_v8 = vpack.c.bf16 %v263_v60, %v259_v59 }
  0x9d   : > { %850 = vmatmul.bf16.gmra.mxu2 %v335_v62  ;;  %v264_v62 = vld [vmem:[%s1407_s20 + $0x2b8] sm:$0xff] }
  0x9e   : > { %939 = vmatmul.bf16.gmra.mxu3 %v336_v63  ;;  %v280_v59 = vld [vmem:[%s1407_s20 + $0x338] sm:$0xff] }
  0xa8   : > { %v638_v11 = vpop.f32.mrf.mxu0 }
  0xa9   : > { %v727_v12 = vpop.f32.mrf.mxu1  ;;  %v639_v15 = vadd.f32 %v1494_v0, %v638_v11 }
  0xab   : > { %677 = vmatmul.bf16.gmra.mxu0 %v337_v9  ;;  %v728_v16 = vadd.f32 %v727_v12, %v639_v15  ;;  %v348_v9 = vpack.c.bf16 %v264_v62, %v260_v61 }
  0xac   : > { %766 = vmatmul.bf16.gmra.mxu1 %v338_v10 }
  0xad   : > { %855 = vmatmul.bf16.gmra.mxu2 %v339_v13 }
  0xae   : > { %944 = vmatmul.bf16.gmra.mxu3 %v340_v14 }
  0xb0   : > { %v816_v17 = vpop.f32.mrf.mxu2  ;;  %v640_v20 = vpop.f32.mrf.mxu0 }
  0xb1   : > { %v905_v18 = vpop.f32.mrf.mxu3  ;;  %v817_v19 = vadd.f32 %v816_v17, %v728_v16  ;;  %v729_v21 = vpop.f32.mrf.mxu1  ;;  %v641_v23 = vadd.f32 %v1494_v0, %v640_v20 }
  0xb3   : > { %v906_v22 = vadd.f32 %v905_v18, %v817_v19  ;;  %v730_v33 = vadd.f32 %v729_v21, %v641_v23  ;;  %v265_v21 = vld [vmem:[%s1407_s20 + $0x2c0] sm:$0xff] }
  0xb5   : > { %v985_v26 = vmax.f32 %v906_v22, 0.0  ;;  %v269_v22 = vld [vmem:[%s1407_s20 + $0x2e0] sm:$0xff] }
  0xb7   : > { %1017 = vst [vmem:[%s1510_s10] sm:$0xff] %v985_v26  ;;  %v267_v26 = vld [vmem:[%s1407_s20 + $0x2d0] sm:$0xff] }
  0xb8   : > { %v818_v34 = vpop.f32.mrf.mxu2  ;;  %v643_v39 = vpop.f32.mrf.mxu0 }
  0xb9   : > { %v907_v35 = vpop.f32.mrf.mxu3  ;;  %v819_v38 = vadd.f32 %v818_v34, %v730_v33  ;;  %v732_v40 = vpop.f32.mrf.mxu1  ;;  %v644_v43 = vadd.f32 %v1494_v0, %v643_v39  ;;  %v349_v33 = vpack.c.bf16 %v269_v22, %v265_v21  ;;  %v350_v34 = vpack.c.bf16 %v270_v25, %v266_v24  ;;  %v282_v21 = vld [vmem:[%s1407_s20 + $0x348] sm:$0xff]  ;;  %v287_v24 = vld [vmem:[%s1407_s20 + $0x370] sm:$0xff]  ;;  %v284_v25 = vld [vmem:[%s1407_s20 + $0x358] sm:$0xff] }
  0xba   : > { %v352_v39 = vpack.c.bf16 %v272_v29, %v268_v28  ;;  %v286_v22 = vld [vmem:[%s1407_s20 + $0x368] sm:$0xff] }
  0xbb   : > { %v908_v44 = vadd.f32 %v907_v35, %v819_v38  ;;  %682 = vmatmul.bf16.gmra.mxu0 %v341_v36  ;;  %v733_v46 = vadd.f32 %v732_v40, %v644_v43  ;;  %v351_v38 = vpack.c.bf16 %v271_v27, %v267_v26  ;;  %v288_v26 = vld [vmem:[%s1407_s20 + $0x378] sm:$0xff] }
  0xbc   : > { %771 = vmatmul.bf16.gmra.mxu1 %v342_v37 }
  0xbd   : > { %v986_v45 = vmax.f32 %v908_v44, 0.0  ;;  %860 = vmatmul.bf16.gmra.mxu2 %v343_v41 }
  0xbe   : > { %949 = vmatmul.bf16.gmra.mxu3 %v344_v42 }
  0xbf   : > { %1018 = vst [vmem:[%s1510_s10 + $0x8] sm:$0xff] %v986_v45 }
  0xc0   : > { %v821_v47 = vpop.f32.mrf.mxu2  ;;  %v645_v50 = vpop.f32.mrf.mxu0 }
  0xc1   : > { %v910_v48 = vpop.f32.mrf.mxu3  ;;  %v822_v49 = vadd.f32 %v821_v47, %v733_v46  ;;  %v734_v51 = vpop.f32.mrf.mxu1  ;;  %v646_v53 = vadd.f32 %v1494_v0, %v645_v50 }
  0xc3   : > { %v911_v52 = vadd.f32 %v910_v48, %v822_v49  ;;  %v735_v63 = vadd.f32 %v734_v51, %v646_v53  ;;  %v273_v51 = vld [vmem:[%s1407_s20 + $0x300] sm:$0xff] }
  0xc5   : > { %v987_v56 = vmax.f32 %v911_v52, 0.0  ;;  %v277_v52 = vld [vmem:[%s1407_s20 + $0x320] sm:$0xff] }
  0xc7   : > { %1019 = vst [vmem:[%s1510_s10 + $0x10] sm:$0xff] %v987_v56  ;;  %v275_v56 = vld [vmem:[%s1407_s20 + $0x310] sm:$0xff] }
  0xc8   : > { %v823_v1 = vpop.f32.mrf.mxu2  ;;  %v648_v6 = vpop.f32.mrf.mxu0 }
  0xc9   : > { %v912_v2 = vpop.f32.mrf.mxu3  ;;  %v824_v5 = vadd.f32 %v823_v1, %v735_v63  ;;  %v737_v7 = vpop.f32.mrf.mxu1  ;;  %v649_v10 = vadd.f32 %v1494_v0, %v648_v6  ;;  %v353_v63 = vpack.c.bf16 %v277_v52, %v273_v51  ;;  %v354_v1 = vpack.c.bf16 %v278_v55, %v274_v54  ;;  %v290_v51 = vld [vmem:[%s1407_s20 + $0x388] sm:$0xff]  ;;  %v295_v54 = vld [vmem:[%s1407_s20 + $0x3b0] sm:$0xff]  ;;  %v292_v55 = vld [vmem:[%s1407_s20 + $0x398] sm:$0xff] }
  0xca   : > { %v356_v6 = vpack.c.bf16 %v280_v59, %v276_v58  ;;  %v294_v52 = vld [vmem:[%s1407_s20 + $0x3a8] sm:$0xff] }
  0xcb   : > { %v913_v11 = vadd.f32 %v912_v2, %v824_v5  ;;  %687 = vmatmul.bf16.gmra.mxu0 %v345_v3  ;;  %v738_v13 = vadd.f32 %v737_v7, %v649_v10  ;;  %v355_v5 = vpack.c.bf16 %v279_v57, %v275_v56  ;;  %v296_v56 = vld [vmem:[%s1407_s20 + $0x3b8] sm:$0xff] }
  0xcc   : > { %776 = vmatmul.bf16.gmra.mxu1 %v346_v4 }
  0xcd   : > { %v988_v12 = vmax.f32 %v913_v11, 0.0  ;;  %865 = vmatmul.bf16.gmra.mxu2 %v347_v8 }
  0xce   : > { %954 = vmatmul.bf16.gmra.mxu3 %v348_v9 }
  0xcf   : > { %1020 = vst [vmem:[%s1510_s10 + $0x18] sm:$0xff] %v988_v12 }
  0xd0   : > { %v826_v14 = vpop.f32.mrf.mxu2  ;;  %v650_v17 = vpop.f32.mrf.mxu0 }
  0xd1   : > { %v915_v15 = vpop.f32.mrf.mxu3  ;;  %v827_v16 = vadd.f32 %v826_v14, %v738_v13  ;;  %v739_v18 = vpop.f32.mrf.mxu1  ;;  %v651_v20 = vadd.f32 %v1494_v0, %v650_v17 }
  0xd3   : > { %v916_v19 = vadd.f32 %v915_v15, %v827_v16  ;;  %v740_v30 = vadd.f32 %v739_v18, %v651_v20  ;;  %v281_v18 = vld [vmem:[%s1407_s20 + $0x340] sm:$0xff] }
  0xd5   : > { %v989_v23 = vmax.f32 %v916_v19, 0.0  ;;  %v285_v19 = vld [vmem:[%s1407_s20 + $0x360] sm:$0xff] }
  0xd7   : > { %1021 = vst [vmem:[%s1510_s10 + $0x20] sm:$0xff] %v989_v23  ;;  %v283_v23 = vld [vmem:[%s1407_s20 + $0x350] sm:$0xff] }
  0xd8   : > { %v828_v31 = vpop.f32.mrf.mxu2  ;;  %v653_v36 = vpop.f32.mrf.mxu0 }
  0xd9   : > { %v917_v32 = vpop.f32.mrf.mxu3  ;;  %v829_v35 = vadd.f32 %v828_v31, %v740_v30  ;;  %v742_v37 = vpop.f32.mrf.mxu1  ;;  %v654_v40 = vadd.f32 %v1494_v0, %v653_v36  ;;  %v357_v30 = vpack.c.bf16 %v285_v19, %v281_v18  ;;  %v358_v31 = vpack.c.bf16 %v286_v22, %v282_v21  ;;  %v298_v18 = vld [vmem:[%s1407_s20 + $0x3c8] sm:$0xff]  ;;  %v303_v21 = vld [vmem:[%s1407_s20 + $0x3f0] sm:$0xff]  ;;  %v300_v22 = vld [vmem:[%s1407_s20 + $0x3d8] sm:$0xff] }
  0xda   : > { %v360_v36 = vpack.c.bf16 %v288_v26, %v284_v25  ;;  %v302_v19 = vld [vmem:[%s1407_s20 + $0x3e8] sm:$0xff] }
  0xdb   : > { %v918_v41 = vadd.f32 %v917_v32, %v829_v35  ;;  %692 = vmatmul.bf16.gmra.mxu0 %v349_v33  ;;  %v743_v43 = vadd.f32 %v742_v37, %v654_v40  ;;  %v359_v35 = vpack.c.bf16 %v287_v24, %v283_v23  ;;  %v304_v23 = vld [vmem:[%s1407_s20 + $0x3f8] sm:$0xff] }
  0xdc   : > { %781 = vmatmul.bf16.gmra.mxu1 %v350_v34 }
  0xdd   : > { %v990_v42 = vmax.f32 %v918_v41, 0.0  ;;  %870 = vmatmul.bf16.gmra.mxu2 %v351_v38 }
  0xde   : > { %959 = vmatmul.bf16.gmra.mxu3 %v352_v39 }
  0xdf   : > { %1022 = vst [vmem:[%s1510_s10 + $0x28] sm:$0xff] %v990_v42 }
  0xe0   : > { %v831_v44 = vpop.f32.mrf.mxu2  ;;  %v655_v47 = vpop.f32.mrf.mxu0 }
  0xe1   : > { %v920_v45 = vpop.f32.mrf.mxu3  ;;  %v832_v46 = vadd.f32 %v831_v44, %v743_v43  ;;  %v744_v48 = vpop.f32.mrf.mxu1  ;;  %v656_v50 = vadd.f32 %v1494_v0, %v655_v47 }
  0xe3   : > { %v921_v49 = vadd.f32 %v920_v45, %v832_v46  ;;  %v745_v60 = vadd.f32 %v744_v48, %v656_v50  ;;  %v289_v48 = vld [vmem:[%s1407_s20 + $0x380] sm:$0xff] }
  0xe5   : > { %v991_v53 = vmax.f32 %v921_v49, 0.0  ;;  %v293_v49 = vld [vmem:[%s1407_s20 + $0x3a0] sm:$0xff] }
  0xe7   : > { %1023 = vst [vmem:[%s1510_s10 + $0x30] sm:$0xff] %v991_v53  ;;  %v291_v53 = vld [vmem:[%s1407_s20 + $0x390] sm:$0xff] }
  0xe8   : > { %v833_v61 = vpop.f32.mrf.mxu2  ;;  %v658_v3 = vpop.f32.mrf.mxu0 }
  0xe9   : > { %v922_v62 = vpop.f32.mrf.mxu3  ;;  %v834_v2 = vadd.f32 %v833_v61, %v745_v60  ;;  %v747_v4 = vpop.f32.mrf.mxu1  ;;  %v659_v7 = vadd.f32 %v1494_v0, %v658_v3  ;;  %v361_v60 = vpack.c.bf16 %v293_v49, %v289_v48  ;;  %v362_v61 = vpack.c.bf16 %v294_v52, %v290_v51 }
  0xea   : > { %v364_v3 = vpack.c.bf16 %v296_v56, %v292_v55 }
  0xeb   : > { %v923_v8 = vadd.f32 %v922_v62, %v834_v2  ;;  %697 = vmatmul.bf16.gmra.mxu0 %v353_v63  ;;  %v748_v10 = vadd.f32 %v747_v4, %v659_v7  ;;  %v363_v2 = vpack.c.bf16 %v295_v54, %v291_v53 }
  0xec   : > { %786 = vmatmul.bf16.gmra.mxu1 %v354_v1 }
  0xed   : > { %v992_v9 = vmax.f32 %v923_v8, 0.0  ;;  %875 = vmatmul.bf16.gmra.mxu2 %v355_v5 }
  0xee   : > { %964 = vmatmul.bf16.gmra.mxu3 %v356_v6 }
  0xef   : > { %1024 = vst [vmem:[%s1510_s10 + $0x38] sm:$0xff] %v992_v9 }
  0xf0   : > { %v836_v11 = vpop.f32.mrf.mxu2  ;;  %v660_v14 = vpop.f32.mrf.mxu0 }
  0xf1   : > { %v925_v12 = vpop.f32.mrf.mxu3  ;;  %v837_v13 = vadd.f32 %v836_v11, %v748_v10  ;;  %v749_v15 = vpop.f32.mrf.mxu1  ;;  %v661_v17 = vadd.f32 %v1494_v0, %v660_v14 }
  0xf3   : > { %v926_v16 = vadd.f32 %v925_v12, %v837_v13  ;;  %v750_v27 = vadd.f32 %v749_v15, %v661_v17  ;;  %v297_v15 = vld [vmem:[%s1407_s20 + $0x3c0] sm:$0xff] }
  0xf5   : > { %v993_v20 = vmax.f32 %v926_v16, 0.0  ;;  %v301_v16 = vld [vmem:[%s1407_s20 + $0x3e0] sm:$0xff] }
  0xf7   : > { %1025 = vst [vmem:[%s1510_s10 + $0x40] sm:$0xff] %v993_v20  ;;  %v299_v20 = vld [vmem:[%s1407_s20 + $0x3d0] sm:$0xff] }
  0xf8   : > { %v838_v28 = vpop.f32.mrf.mxu2  ;;  %v663_v33 = vpop.f32.mrf.mxu0 }
  0xf9   : > { %v927_v29 = vpop.f32.mrf.mxu3  ;;  %v839_v32 = vadd.f32 %v838_v28, %v750_v27  ;;  %v752_v34 = vpop.f32.mrf.mxu1  ;;  %v664_v37 = vadd.f32 %v1494_v0, %v663_v33  ;;  %v365_v27 = vpack.c.bf16 %v301_v16, %v297_v15  ;;  %v366_v28 = vpack.c.bf16 %v302_v19, %v298_v18 }
  0xfa   : > { %v368_v33 = vpack.c.bf16 %v304_v23, %v300_v22 }
  0xfb   : > { %v928_v38 = vadd.f32 %v927_v29, %v839_v32  ;;  %702 = vmatmul.bf16.gmra.mxu0 %v357_v30  ;;  %v753_v40 = vadd.f32 %v752_v34, %v664_v37  ;;  %v367_v32 = vpack.c.bf16 %v303_v21, %v299_v20 }
  0xfc   : > { %791 = vmatmul.bf16.gmra.mxu1 %v358_v31 }
  0xfd   : > { %v994_v39 = vmax.f32 %v928_v38, 0.0  ;;  %880 = vmatmul.bf16.gmra.mxu2 %v359_v35 }
  0xfe   : > { %969 = vmatmul.bf16.gmra.mxu3 %v360_v36 }
  0xff   : > { %1026 = vst [vmem:[%s1510_s10 + $0x48] sm:$0xff] %v994_v39 }
 0x100   : > { %v841_v41 = vpop.f32.mrf.mxu2  ;;  %v665_v44 = vpop.f32.mrf.mxu0 }
 0x101   : > { %v930_v42 = vpop.f32.mrf.mxu3  ;;  %v842_v43 = vadd.f32 %v841_v41, %v753_v40  ;;  %v754_v45 = vpop.f32.mrf.mxu1  ;;  %v666_v47 = vadd.f32 %v1494_v0, %v665_v44 }
 0x103   : > { %v931_v46 = vadd.f32 %v930_v42, %v842_v43  ;;  %v755_v57 = vadd.f32 %v754_v45, %v666_v47 }
 0x105   : > { %v995_v50 = vmax.f32 %v931_v46, 0.0 }
 0x107   : > { %1027 = vst [vmem:[%s1510_s10 + $0x50] sm:$0xff] %v995_v50 }
 0x108   : > { %v843_v58 = vpop.f32.mrf.mxu2  ;;  %v668_v63 = vpop.f32.mrf.mxu0 }
 0x109   : > { %v932_v59 = vpop.f32.mrf.mxu3  ;;  %v844_v62 = vadd.f32 %v843_v58, %v755_v57  ;;  %v757_v1 = vpop.f32.mrf.mxu1  ;;  %v669_v4 = vadd.f32 %v1494_v0, %v668_v63 }
 0x10b   : > { %v933_v5 = vadd.f32 %v932_v59, %v844_v62  ;;  %707 = vmatmul.bf16.gmra.mxu0 %v361_v60  ;;  %v758_v7 = vadd.f32 %v757_v1, %v669_v4 }
 0x10c   : > { %796 = vmatmul.bf16.gmra.mxu1 %v362_v61 }
 0x10d   : > { %v996_v6 = vmax.f32 %v933_v5, 0.0  ;;  %885 = vmatmul.bf16.gmra.mxu2 %v363_v2 }
 0x10e   : > { %974 = vmatmul.bf16.gmra.mxu3 %v364_v3 }
 0x10f   : > { %1028 = vst [vmem:[%s1510_s10 + $0x58] sm:$0xff] %v996_v6 }
 0x110   : > { %v846_v8 = vpop.f32.mrf.mxu2  ;;  %v670_v11 = vpop.f32.mrf.mxu0 }
 0x111   : > { %v935_v9 = vpop.f32.mrf.mxu3  ;;  %v847_v10 = vadd.f32 %v846_v8, %v758_v7  ;;  %v759_v12 = vpop.f32.mrf.mxu1  ;;  %v671_v14 = vadd.f32 %v1494_v0, %v670_v11 }
 0x113   : > { %v936_v13 = vadd.f32 %v935_v9, %v847_v10  ;;  %v760_v24 = vadd.f32 %v759_v12, %v671_v14 }
 0x115   : > { %v997_v17 = vmax.f32 %v936_v13, 0.0 }
 0x117   : > { %1029 = vst [vmem:[%s1510_s10 + $0x60] sm:$0xff] %v997_v17 }
 0x118   : > { %v848_v25 = vpop.f32.mrf.mxu2  ;;  %v673_v30 = vpop.f32.mrf.mxu0 }
 0x119   : > { %v937_v26 = vpop.f32.mrf.mxu3  ;;  %v849_v29 = vadd.f32 %v848_v25, %v760_v24  ;;  %v762_v31 = vpop.f32.mrf.mxu1  ;;  %v674_v34 = vadd.f32 %v1494_v0, %v673_v30 }
 0x11b   : > { %v938_v35 = vadd.f32 %v937_v26, %v849_v29  ;;  %712 = vmatmul.bf16.gmra.mxu0 %v365_v27  ;;  %v763_v37 = vadd.f32 %v762_v31, %v674_v34 }
 0x11c   : > { %801 = vmatmul.bf16.gmra.mxu1 %v366_v28 }
 0x11d   : > { %v998_v36 = vmax.f32 %v938_v35, 0.0  ;;  %890 = vmatmul.bf16.gmra.mxu2 %v367_v32 }
 0x11e   : > { %979 = vmatmul.bf16.gmra.mxu3 %v368_v33 }
 0x11f   : > { %1030 = vst [vmem:[%s1510_s10 + $0x68] sm:$0xff] %v998_v36 }
 0x120   : > { %v851_v38 = vpop.f32.mrf.mxu2  ;;  %v675_v41 = vpop.f32.mrf.mxu0 }
 0x121   : > { %v940_v39 = vpop.f32.mrf.mxu3  ;;  %v852_v40 = vadd.f32 %v851_v38, %v763_v37  ;;  %v764_v42 = vpop.f32.mrf.mxu1  ;;  %v676_v44 = vadd.f32 %v1494_v0, %v675_v41 }
 0x123   : > { %v941_v43 = vadd.f32 %v940_v39, %v852_v40  ;;  %v765_v46 = vadd.f32 %v764_v42, %v676_v44 }
 0x125   : > { %v999_v45 = vmax.f32 %v941_v43, 0.0 }
 0x127   : > { %1031 = vst [vmem:[%s1510_s10 + $0x70] sm:$0xff] %v999_v45 }
 0x128   : > { %v853_v47 = vpop.f32.mrf.mxu2  ;;  %v678_v50 = vpop.f32.mrf.mxu0 }
 0x129   : > { %v942_v48 = vpop.f32.mrf.mxu3  ;;  %v854_v49 = vadd.f32 %v853_v47, %v765_v46  ;;  %v767_v51 = vpop.f32.mrf.mxu1  ;;  %v679_v52 = vadd.f32 %v1494_v0, %v678_v50 }
 0x12b   : > { %v943_v53 = vadd.f32 %v942_v48, %v854_v49  ;;  %v768_v55 = vadd.f32 %v767_v51, %v679_v52 }
 0x12d   : > { %v1000_v54 = vmax.f32 %v943_v53, 0.0 }
 0x12f   : > { %1032 = vst [vmem:[%s1510_s10 + $0x78] sm:$0xff] %v1000_v54 }
 0x130   : > { %v856_v56 = vpop.f32.mrf.mxu2  ;;  %v680_v59 = vpop.f32.mrf.mxu0 }
 0x131   : > { %v945_v57 = vpop.f32.mrf.mxu3  ;;  %v857_v58 = vadd.f32 %v856_v56, %v768_v55  ;;  %v769_v60 = vpop.f32.mrf.mxu1  ;;  %v681_v62 = vadd.f32 %v1494_v0, %v680_v59 }
 0x133   : > { %v946_v61 = vadd.f32 %v945_v57, %v857_v58  ;;  %v770_v1 = vadd.f32 %v769_v60, %v681_v62 }
 0x135   : > { %v1001_v63 = vmax.f32 %v946_v61, 0.0 }
 0x137   : > { %1033 = vst [vmem:[%s1510_s10 + $0x80] sm:$0xff] %v1001_v63 }
 0x138   : > { %v858_v2 = vpop.f32.mrf.mxu2  ;;  %v683_v5 = vpop.f32.mrf.mxu0 }
 0x139   : > { %v947_v3 = vpop.f32.mrf.mxu3  ;;  %v859_v4 = vadd.f32 %v858_v2, %v770_v1  ;;  %v772_v6 = vpop.f32.mrf.mxu1  ;;  %v684_v7 = vadd.f32 %v1494_v0, %v683_v5 }
 0x13b   : > { %v948_v8 = vadd.f32 %v947_v3, %v859_v4  ;;  %v773_v10 = vadd.f32 %v772_v6, %v684_v7 }
 0x13d   : > { %v1002_v9 = vmax.f32 %v948_v8, 0.0 }
 0x13f   : > { %1034 = vst [vmem:[%s1510_s10 + $0x88] sm:$0xff] %v1002_v9 }
 0x140   : > { %v861_v11 = vpop.f32.mrf.mxu2  ;;  %v685_v14 = vpop.f32.mrf.mxu0 }
 0x141   : > { %v950_v12 = vpop.f32.mrf.mxu3  ;;  %v862_v13 = vadd.f32 %v861_v11, %v773_v10  ;;  %v774_v15 = vpop.f32.mrf.mxu1  ;;  %v686_v17 = vadd.f32 %v1494_v0, %v685_v14 }
 0x143   : > { %v951_v16 = vadd.f32 %v950_v12, %v862_v13  ;;  %v775_v19 = vadd.f32 %v774_v15, %v686_v17 }
 0x145   : > { %v1003_v18 = vmax.f32 %v951_v16, 0.0 }
 0x147   : > { %1035 = vst [vmem:[%s1510_s10 + $0x90] sm:$0xff] %v1003_v18 }
 0x148   : > { %v863_v20 = vpop.f32.mrf.mxu2  ;;  %v688_v23 = vpop.f32.mrf.mxu0 }
 0x149   : > { %v952_v21 = vpop.f32.mrf.mxu3  ;;  %v864_v22 = vadd.f32 %v863_v20, %v775_v19  ;;  %v777_v24 = vpop.f32.mrf.mxu1  ;;  %v689_v25 = vadd.f32 %v1494_v0, %v688_v23 }
 0x14b   : > { %v953_v26 = vadd.f32 %v952_v21, %v864_v22  ;;  %v778_v28 = vadd.f32 %v777_v24, %v689_v25 }
 0x14d   : > { %v1004_v27 = vmax.f32 %v953_v26, 0.0 }
 0x14f   : > { %1036 = vst [vmem:[%s1510_s10 + $0x98] sm:$0xff] %v1004_v27 }
 0x150   : > { %v866_v29 = vpop.f32.mrf.mxu2  ;;  %v690_v32 = vpop.f32.mrf.mxu0 }
 0x151   : > { %v955_v30 = vpop.f32.mrf.mxu3  ;;  %v867_v31 = vadd.f32 %v866_v29, %v778_v28  ;;  %v779_v33 = vpop.f32.mrf.mxu1  ;;  %v691_v35 = vadd.f32 %v1494_v0, %v690_v32 }
 0x153   : > { %v956_v34 = vadd.f32 %v955_v30, %v867_v31  ;;  %v780_v37 = vadd.f32 %v779_v33, %v691_v35 }
 0x155   : > { %v1005_v36 = vmax.f32 %v956_v34, 0.0 }
 0x157   : > { %1037 = vst [vmem:[%s1510_s10 + $0xa0] sm:$0xff] %v1005_v36 }
 0x158   : > { %v868_v38 = vpop.f32.mrf.mxu2  ;;  %v693_v41 = vpop.f32.mrf.mxu0 }
 0x159   : > { %v957_v39 = vpop.f32.mrf.mxu3  ;;  %v869_v40 = vadd.f32 %v868_v38, %v780_v37  ;;  %v782_v42 = vpop.f32.mrf.mxu1  ;;  %v694_v43 = vadd.f32 %v1494_v0, %v693_v41 }
 0x15b   : > { %v958_v44 = vadd.f32 %v957_v39, %v869_v40  ;;  %v783_v46 = vadd.f32 %v782_v42, %v694_v43 }
 0x15d   : > { %v1006_v45 = vmax.f32 %v958_v44, 0.0 }
 0x15f   : > { %1038 = vst [vmem:[%s1510_s10 + $0xa8] sm:$0xff] %v1006_v45 }
 0x160   : > { %v871_v47 = vpop.f32.mrf.mxu2  ;;  %v695_v50 = vpop.f32.mrf.mxu0 }
 0x161   : > { %v960_v48 = vpop.f32.mrf.mxu3  ;;  %v872_v49 = vadd.f32 %v871_v47, %v783_v46  ;;  %v784_v51 = vpop.f32.mrf.mxu1  ;;  %v696_v53 = vadd.f32 %v1494_v0, %v695_v50 }
 0x163   : > { %v961_v52 = vadd.f32 %v960_v48, %v872_v49  ;;  %v785_v55 = vadd.f32 %v784_v51, %v696_v53 }
 0x165   : > { %v1007_v54 = vmax.f32 %v961_v52, 0.0 }
 0x167   : > { %1039 = vst [vmem:[%s1510_s10 + $0xb0] sm:$0xff] %v1007_v54 }
 0x168   : > { %v873_v56 = vpop.f32.mrf.mxu2  ;;  %v698_v59 = vpop.f32.mrf.mxu0 }
 0x169   : > { %v962_v57 = vpop.f32.mrf.mxu3  ;;  %v874_v58 = vadd.f32 %v873_v56, %v785_v55  ;;  %v787_v60 = vpop.f32.mrf.mxu1  ;;  %v699_v61 = vadd.f32 %v1494_v0, %v698_v59 }
 0x16b   : > { %v963_v62 = vadd.f32 %v962_v57, %v874_v58  ;;  %v788_v1 = vadd.f32 %v787_v60, %v699_v61 }
 0x16d   : > { %v1008_v63 = vmax.f32 %v963_v62, 0.0 }
 0x16f   : > { %1040 = vst [vmem:[%s1510_s10 + $0xb8] sm:$0xff] %v1008_v63 }
 0x170   : > { %v876_v2 = vpop.f32.mrf.mxu2  ;;  %v700_v5 = vpop.f32.mrf.mxu0 }
 0x171   : > { %v965_v3 = vpop.f32.mrf.mxu3  ;;  %v877_v4 = vadd.f32 %v876_v2, %v788_v1  ;;  %v789_v6 = vpop.f32.mrf.mxu1  ;;  %v701_v8 = vadd.f32 %v1494_v0, %v700_v5 }
 0x173   : > { %v966_v7 = vadd.f32 %v965_v3, %v877_v4  ;;  %v790_v10 = vadd.f32 %v789_v6, %v701_v8 }
 0x175   : > { %v1009_v9 = vmax.f32 %v966_v7, 0.0 }
 0x177   : > { %1041 = vst [vmem:[%s1510_s10 + $0xc0] sm:$0xff] %v1009_v9 }
 0x178   : > { %v878_v11 = vpop.f32.mrf.mxu2  ;;  %v703_v14 = vpop.f32.mrf.mxu0 }
 0x179   : > { %v967_v12 = vpop.f32.mrf.mxu3  ;;  %v879_v13 = vadd.f32 %v878_v11, %v790_v10  ;;  %v792_v15 = vpop.f32.mrf.mxu1  ;;  %v704_v16 = vadd.f32 %v1494_v0, %v703_v14 }
 0x17b   : > { %v968_v17 = vadd.f32 %v967_v12, %v879_v13  ;;  %v793_v19 = vadd.f32 %v792_v15, %v704_v16 }
 0x17d   : > { %v1010_v18 = vmax.f32 %v968_v17, 0.0 }
 0x17f   : > { %1042 = vst [vmem:[%s1510_s10 + $0xc8] sm:$0xff] %v1010_v18 }
 0x180   : > { %v881_v20 = vpop.f32.mrf.mxu2  ;;  %v705_v23 = vpop.f32.mrf.mxu0 }
 0x181   : > { %v970_v21 = vpop.f32.mrf.mxu3  ;;  %v882_v22 = vadd.f32 %v881_v20, %v793_v19  ;;  %v794_v24 = vpop.f32.mrf.mxu1  ;;  %v706_v26 = vadd.f32 %v1494_v0, %v705_v23 }
 0x183   : > { %v971_v25 = vadd.f32 %v970_v21, %v882_v22  ;;  %v795_v28 = vadd.f32 %v794_v24, %v706_v26 }
 0x185   : > { %v1011_v27 = vmax.f32 %v971_v25, 0.0 }
 0x187   : > { %1043 = vst [vmem:[%s1510_s10 + $0xd0] sm:$0xff] %v1011_v27 }
 0x188   : > { %v883_v29 = vpop.f32.mrf.mxu2  ;;  %v708_v32 = vpop.f32.mrf.mxu0 }
 0x189   : > { %v972_v30 = vpop.f32.mrf.mxu3  ;;  %v884_v31 = vadd.f32 %v883_v29, %v795_v28  ;;  %v797_v33 = vpop.f32.mrf.mxu1  ;;  %v709_v34 = vadd.f32 %v1494_v0, %v708_v32 }
 0x18b   : > { %v973_v35 = vadd.f32 %v972_v30, %v884_v31  ;;  %v798_v37 = vadd.f32 %v797_v33, %v709_v34 }
 0x18d   : > { %v1012_v36 = vmax.f32 %v973_v35, 0.0 }
 0x18f   : > { %1044 = vst [vmem:[%s1510_s10 + $0xd8] sm:$0xff] %v1012_v36 }
 0x190   : > { %v886_v38 = vpop.f32.mrf.mxu2  ;;  %v710_v41 = vpop.f32.mrf.mxu0 }
 0x191   : > { %v975_v39 = vpop.f32.mrf.mxu3  ;;  %v887_v40 = vadd.f32 %v886_v38, %v798_v37  ;;  %v799_v42 = vpop.f32.mrf.mxu1  ;;  %v711_v44 = vadd.f32 %v1494_v0, %v710_v41 }
 0x193   : > { %v976_v43 = vadd.f32 %v975_v39, %v887_v40  ;;  %v800_v46 = vadd.f32 %v799_v42, %v711_v44 }
 0x195   : > { %v1013_v45 = vmax.f32 %v976_v43, 0.0 }
 0x197   : > { %1045 = vst [vmem:[%s1510_s10 + $0xe0] sm:$0xff] %v1013_v45 }
 0x198   : > { %v888_v47 = vpop.f32.mrf.mxu2  ;;  %v713_v50 = vpop.f32.mrf.mxu0 }
 0x199   : > { %v977_v48 = vpop.f32.mrf.mxu3  ;;  %v889_v49 = vadd.f32 %v888_v47, %v800_v46  ;;  %v714_v51 = vadd.f32 %v1494_v0, %v713_v50  ;;  %v802_v53 = vpop.f32.mrf.mxu1 }
 0x19b   : > { %v978_v52 = vadd.f32 %v977_v48, %v889_v49  ;;  %v803_v55 = vadd.f32 %v802_v53, %v714_v51 }
 0x19d   : > { %v1014_v54 = vmax.f32 %v978_v52, 0.0 }
 0x19f   : > { %1046 = vst [vmem:[%s1510_s10 + $0xe8] sm:$0xff] %v1014_v54 }
 0x1a0   : > { %v891_v56 = vpop.f32.mrf.mxu2  ;;  %v715_v59 = vpop.f32.mrf.mxu0 }
 0x1a1   : > { %v980_v57 = vpop.f32.mrf.mxu3  ;;  %v892_v58 = vadd.f32 %v891_v56, %v803_v55  ;;  %v716_v61 = vadd.f32 %v1494_v0, %v715_v59  ;;  %v804_v63 = vpop.f32.mrf.mxu1 }
 0x1a3   : > { %v981_v60 = vadd.f32 %v980_v57, %v892_v58  ;;  %v805_v1 = vadd.f32 %v804_v63, %v716_v61 }
 0x1a5   : > { %v1015_v62 = vmax.f32 %v981_v60, 0.0 }
 0x1a7   : > { %1047 = vst [vmem:[%s1510_s10 + $0xf0] sm:$0xff] %v1015_v62 }
 0x1a8   : > { %v893_v2 = vpop.f32.mrf.mxu2 }
 0x1a9   : > { %v894_v3 = vadd.f32 %v893_v2, %v805_v1  ;;  %v982_v4 = vpop.f32.mrf.mxu3 }
 0x1ab   : > { %v983_v5 = vadd.f32 %v982_v4, %v894_v3 }
 0x1ad   : > { %v1016_v6 = vmax.f32 %v983_v5, 0.0 }
 0x1af   : > { %1048 = vst [vmem:[%s1510_s10 + $0xf8] sm:$0xff] %v1016_v6 }
 0x1b0 PF: > { %s13_s12 = sadd.s32 1, %s1293_s12  }
 0x1b1   : > { %p10_p4 = scmp.ge.s32.totalorder %s13_s12, 4  }
 0x1b3   :  { %12 = sbr.rel (!%p10_p4) target bundleno = 1 (0x1), region = 62 }

// kernel: gcn_forward.4
= control target key start
LH: loop header
LB: loop body
LE: loop exit
PB: predicated region body
PF: predicated region fallthrough
CT: control target
= control target key end

     0   :  { %s1707_s15 = smov 0   ;;  %s2105_s0 = inlined_call_operand.vmem [shape: f32[512,512], index: 0, kind: input, shape index: {}]   ;;  %s2106_s1 = inlined_call_operand.vmem [shape: bf16[512,128], index: 1, kind: input, shape index: {}]   ;;  %s2107_s2 = inlined_call_operand.vmem [shape: f32[1,128], index: 2, kind: input, shape index: {}]   ;;  %s2108_s3 = inlined_call_operand.vmem [shape: bf16[128,128], index: 3, kind: input, shape index: {}]   ;;  %s2109_s4 = inlined_call_operand.vmem [shape: bf16[512,128], index: 4, kind: output, shape index: {}]  }
   0x1 LB: > { %s1333_s16 = sadd.s32 4294967295, %s1680_s15   ;;  %p1337_p0 = scmp.ge.s32.totalorder %s1680_s15, 1  ;;  %s1680_s15 = sphi %s1707_s15, %s14_s15  }
   0x2   : > { %p164_p1 = scmp.lt.s32.totalorder %s1680_s15, 3 }
   0x4   : > { %p165_p2 = pnand %p1337_p0, %p164_p1 }
   0x5   : > { %s1338_s23 = sshll.u32 (!%p165_p2), %s1333_s16, 5 }
   0x6   : > { %168 = sbr.rel (%p165_p2) target bundleno = 633 (0x279), region = 36  ;;  %p192_p3 = scmp.lt.s32.totalorder (!%p165_p2), %s1338_s23, 63 }
   0xb   : > { %v1513_v0 = vld [vmem:[%s2106_s1 + $0x38] sm:$0xff]  ;;  %v1512_v1 = vld [vmem:[%s2106_s1 + $0x30] sm:$0xff]  ;;  %v1511_v2 = vld [vmem:[%s2106_s1 + $0x28] sm:$0xff]  ;;  %s2111_s23 = smov (!%p192_p3, %s1338_s23), 63 }
   0xc   : > { %1641 = vmatpush.bf16.msra.mxu1 %v1513_v0  ;;  %1642 = vmatpush.bf16.msra.mxu2 %v1513_v0  ;;  %v1510_v3 = vld [vmem:[%s2106_s1 + $0x20] sm:$0xff]  ;;  %v1509_v4 = vld [vmem:[%s2106_s1 + $0x18] sm:$0xff]  ;;  %v1508_v5 = vld [vmem:[%s2106_s1 + $0x10] sm:$0xff]  ;;  %s1505_s30 = sshll.u32 %s2111_s23, 5 }
   0xd   : > { %1643 = vmatpush.bf16.msra.mxu3 %v1513_v0  ;;  %656 = vmatpush.bf16.msra.mxu0 %v1513_v0  ;;  %v1507_v6 = vld [vmem:[%s2106_s1 + $0x8] sm:$0xff]  ;;  %s1742_s9 = scalar_lea.vmem %s2105_s0, %s1505_s30  ;;  %v1506_v7 = vld [vmem:[%s2106_s1] sm:$0xff]  ;;  %v1529_v14 = vld [vmem:[%s2106_s1 + $0xb8] sm:$0xff] }
   0xe   : > { %v236_v8 = vld [vmem:[%s1742_s9 + $0x100] sm:$0xff]  ;;  %v1537_v15 = vld [vmem:[%s2106_s1 + $0xf8] sm:$0xff]  ;;  %v1528_v20 = vld [vmem:[%s2106_s1 + $0xb0] sm:$0xff] }
   0xf   : > { %v240_v9 = vld [vmem:[%s1742_s9 + $0x120] sm:$0xff]  ;;  %v1521_v16 = vld [vmem:[%s2106_s1 + $0x78] sm:$0xff]  ;;  %v1536_v21 = vld [vmem:[%s2106_s1 + $0xf0] sm:$0xff] }
  0x10   : > { %1644 = vmatpush.bf16.msra.mxu1 %v1512_v1  ;;  %1645 = vmatpush.bf16.msra.mxu2 %v1512_v1  ;;  %v268_v10 = vld [vmem:[%s1742_s9 + $0x200] sm:$0xff]  ;;  %v348_v17 = vpack.c.bf16 %v240_v9, %v236_v8  ;;  %v1520_v22 = vld [vmem:[%s2106_s1 + $0x70] sm:$0xff]  ;;  %v1527_v23 = vld [vmem:[%s2106_s1 + $0xa8] sm:$0xff] }
  0x11   : > { %1646 = vmatpush.bf16.msra.mxu3 %v1512_v1  ;;  %657 = vmatpush.bf16.msra.mxu0 %v1512_v1  ;;  %v272_v11 = vld [vmem:[%s1742_s9 + $0x220] sm:$0xff]  ;;  %v1535_v24 = vld [vmem:[%s2106_s1 + $0xe8] sm:$0xff]  ;;  %v1525_v35 = vld [vmem:[%s2106_s1 + $0x98] sm:$0xff] }
  0x12   : > { %v300_v12 = vld [vmem:[%s1742_s9 + $0x300] sm:$0xff]  ;;  %v364_v18 = vpack.c.bf16 %v272_v11, %v268_v10  ;;  %v1519_v25 = vld [vmem:[%s2106_s1 + $0x68] sm:$0xff]  ;;  %v1533_v36 = vld [vmem:[%s2106_s1 + $0xd8] sm:$0xff] }
  0x13   : > { %v304_v13 = vld [vmem:[%s1742_s9 + $0x320] sm:$0xff]  ;;  %v1517_v37 = vld [vmem:[%s2106_s1 + $0x58] sm:$0xff]  ;;  %v1524_v41 = vld [vmem:[%s2106_s1 + $0x90] sm:$0xff] }
  0x14   : > { %1647 = vmatpush.bf16.msra.mxu1 %v1511_v2  ;;  %1648 = vmatpush.bf16.msra.mxu2 %v1511_v2  ;;  %v380_v19 = vpack.c.bf16 %v304_v13, %v300_v12  ;;  %v1526_v26 = vld [vmem:[%s2106_s1 + $0xa0] sm:$0xff]  ;;  %v1532_v42 = vld [vmem:[%s2106_s1 + $0xd0] sm:$0xff]  ;;  %v1523_v44 = vld [vmem:[%s2106_s1 + $0x88] sm:$0xff] }
  0x15   : > { %1649 = vmatpush.bf16.msra.mxu3 %v1511_v2  ;;  %658 = vmatpush.bf16.msra.mxu0 %v1511_v2  ;;  %v1534_v27 = vld [vmem:[%s2106_s1 + $0xe0] sm:$0xff]  ;;  %v1516_v43 = vld [vmem:[%s2106_s1 + $0x50] sm:$0xff]  ;;  %v1531_v47 = vld [vmem:[%s2106_s1 + $0xc8] sm:$0xff] }
  0x16   : > { %v1518_v28 = vld [vmem:[%s2106_s1 + $0x60] sm:$0xff]  ;;  %v1515_v48 = vld [vmem:[%s2106_s1 + $0x48] sm:$0xff] }
  0x17   : > { %v244_v29 = vld [vmem:[%s1742_s9 + $0x140] sm:$0xff]  ;;  %v205_v13 = vld [vmem:[%s1742_s9 + $0x8] sm:$0xff] }
  0x18   : > { %1650 = vmatpush.bf16.msra.mxu1 %v1510_v3  ;;  %1651 = vmatpush.bf16.msra.mxu2 %v1510_v3  ;;  %v248_v30 = vld [vmem:[%s1742_s9 + $0x160] sm:$0xff] }
  0x19   : > { %1652 = vmatpush.bf16.msra.mxu3 %v1510_v3  ;;  %659 = vmatpush.bf16.msra.mxu0 %v1510_v3  ;;  %v276_v31 = vld [vmem:[%s1742_s9 + $0x240] sm:$0xff]  ;;  %v352_v38 = vpack.c.bf16 %v248_v30, %v244_v29  ;;  %v215_v29 = vld [vmem:[%s1742_s9 + $0x58] sm:$0xff] }
  0x1a   : > { %v280_v32 = vld [vmem:[%s1742_s9 + $0x260] sm:$0xff]  ;;  %v219_v30 = vld [vmem:[%s1742_s9 + $0x78] sm:$0xff] }
  0x1b   : > { %v308_v33 = vld [vmem:[%s1742_s9 + $0x340] sm:$0xff]  ;;  %v368_v39 = vpack.c.bf16 %v280_v32, %v276_v31 }
  0x1c   : > { %1653 = vmatpush.bf16.msra.mxu1 %v1509_v4  ;;  %1654 = vmatpush.bf16.msra.mxu2 %v1509_v4  ;;  %v312_v34 = vld [vmem:[%s1742_s9 + $0x360] sm:$0xff] }
  0x1d   : > { %1655 = vmatpush.bf16.msra.mxu3 %v1509_v4  ;;  %660 = vmatpush.bf16.msra.mxu0 %v1509_v4  ;;  %v384_v40 = vpack.c.bf16 %v312_v34, %v308_v33  ;;  %v204_v45 = vld [vmem:[%s1742_s9] sm:$0xff]  ;;  %v339_v33 = vpack.c.bf16 %v219_v30, %v215_v29  ;;  %v221_v34 = vld [vmem:[%s1742_s9 + $0x88] sm:$0xff] }
  0x1e   : > { %v208_v46 = vld [vmem:[%s1742_s9 + $0x20] sm:$0xff] }
  0x1f   : > { %v332_v49 = vpack.c.bf16 %v208_v46, %v204_v45  ;;  %v1522_v50 = vld [vmem:[%s2106_s1 + $0x80] sm:$0xff]  ;;  %v230_v45 = vld [vmem:[%s1742_s9 + $0xd0] sm:$0xff] }
  0x20   : > { %1656 = vmatpush.bf16.msra.mxu1 %v1508_v5  ;;  %1657 = vmatpush.bf16.msra.mxu2 %v1508_v5  ;;  %v1530_v51 = vld [vmem:[%s2106_s1 + $0xc0] sm:$0xff]  ;;  %v234_v46 = vld [vmem:[%s1742_s9 + $0xf0] sm:$0xff] }
  0x21   : > { %1658 = vmatpush.bf16.msra.mxu3 %v1508_v5  ;;  %661 = vmatpush.bf16.msra.mxu0 %v1508_v5  ;;  %v1514_v52 = vld [vmem:[%s2106_s1 + $0x40] sm:$0xff] }
  0x22   : > { %v252_v53 = vld [vmem:[%s1742_s9 + $0x180] sm:$0xff] }
  0x23   : > { %v256_v54 = vld [vmem:[%s1742_s9 + $0x1a0] sm:$0xff] }
  0x24   : > { %1659 = vmatpush.bf16.msra.mxu1 %v1507_v6  ;;  %1660 = vmatpush.bf16.msra.mxu2 %v1507_v6  ;;  %v284_v55 = vld [vmem:[%s1742_s9 + $0x280] sm:$0xff]  ;;  %v356_v59 = vpack.c.bf16 %v256_v54, %v252_v53  ;;  %v237_v53 = vld [vmem:[%s1742_s9 + $0x108] sm:$0xff] }
  0x25   : > { %1661 = vmatpush.bf16.msra.mxu3 %v1507_v6  ;;  %662 = vmatpush.bf16.msra.mxu0 %v1507_v6  ;;  %v288_v56 = vld [vmem:[%s1742_s9 + $0x2a0] sm:$0xff]  ;;  %v241_v54 = vld [vmem:[%s1742_s9 + $0x128] sm:$0xff] }
  0x26   : > { %v316_v57 = vld [vmem:[%s1742_s9 + $0x380] sm:$0xff]  ;;  %v372_v60 = vpack.c.bf16 %v288_v56, %v284_v55  ;;  %v238_v55 = vld [vmem:[%s1742_s9 + $0x110] sm:$0xff] }
  0x27   : > { %v320_v58 = vld [vmem:[%s1742_s9 + $0x3a0] sm:$0xff]  ;;  %v242_v56 = vld [vmem:[%s1742_s9 + $0x130] sm:$0xff] }
  0x28   : > { %1662 = vmatpush.bf16.msra.mxu1 %v1506_v7  ;;  %1663 = vmatpush.bf16.msra.mxu2 %v1506_v7  ;;  %v388_v61 = vpack.c.bf16 %v320_v58, %v316_v57  ;;  %v212_v62 = vld [vmem:[%s1742_s9 + $0x40] sm:$0xff]  ;;  %v239_v57 = vld [vmem:[%s1742_s9 + $0x118] sm:$0xff] }
  0x29   : > { %1664 = vmatpush.bf16.msra.mxu3 %v1506_v7  ;;  %663 = vmatpush.bf16.msra.mxu0 %v1506_v7  ;;  %v216_v63 = vld [vmem:[%s1742_s9 + $0x60] sm:$0xff]  ;;  %v243_v58 = vld [vmem:[%s1742_s9 + $0x138] sm:$0xff] }
  0x2a   : > { %v336_v0 = vpack.c.bf16 %v216_v63, %v212_v62  ;;  %v260_v1 = vld [vmem:[%s1742_s9 + $0x1c0] sm:$0xff]  ;;  %v351_v62 = vpack.c.bf16 %v243_v58, %v239_v57  ;;  %v1544_v63 = vld [vmem:[%s2108_s3 + $0x30] sm:$0xff]  ;;  %v273_v57 = vld [vmem:[%s1742_s9 + $0x228] sm:$0xff] }
  0x2b   : > { %684 = vmatmul.bf16.vlgmr.msra.gmra.mxu1 %v348_v17  ;;  %704 = vmatmul.bf16.vlgmr.msra.gmra.mxu2 %v364_v18  ;;  %v264_v2 = vld [vmem:[%s1742_s9 + $0x1e0] sm:$0xff]  ;;  %v207_v17 = vld [vmem:[%s1742_s9 + $0x18] sm:$0xff]  ;;  %v270_v58 = vld [vmem:[%s1742_s9 + $0x210] sm:$0xff] }
  0x2c   : > { %834 = vmatpush.bf16.msrb.mxu2 %v1529_v14  ;;  %745 = vmatpush.bf16.msrb.mxu1 %v1521_v16  ;;  %v292_v3 = vld [vmem:[%s1742_s9 + $0x2c0] sm:$0xff]  ;;  %v360_v7 = vpack.c.bf16 %v264_v2, %v260_v1  ;;  %v209_v14 = vld [vmem:[%s1742_s9 + $0x28] sm:$0xff]  ;;  %v210_v16 = vld [vmem:[%s1742_s9 + $0x30] sm:$0xff] }
  0x2d   : > { %923 = vmatpush.bf16.msrb.mxu3 %v1537_v15  ;;  %664 = vmatmul.bf16.vlgmr.msra.gmra.mxu0 %v332_v49  ;;  %v296_v4 = vld [vmem:[%s1742_s9 + $0x2e0] sm:$0xff]  ;;  %v206_v15 = vld [vmem:[%s1742_s9 + $0x10] sm:$0xff]  ;;  %v211_v18 = vld [vmem:[%s1742_s9 + $0x38] sm:$0xff] }
  0x2e   : > { %724 = vmatmul.bf16.vlgmr.msra.gmra.mxu3 %v380_v19  ;;  %v324_v5 = vld [vmem:[%s1742_s9 + $0x3c0] sm:$0xff]  ;;  %v376_v8 = vpack.c.bf16 %v296_v4, %v292_v3  ;;  %v333_v19 = vpack.c.bf16 %v209_v14, %v205_v13  ;;  %v1543_v3 = vld [vmem:[%s2108_s3 + $0x28] sm:$0xff] }
  0x2f   : > { %v328_v6 = vld [vmem:[%s1742_s9 + $0x3e0] sm:$0xff]  ;;  %v245_v4 = vld [vmem:[%s1742_s9 + $0x148] sm:$0xff] }
  0x30   : > { %835 = vmatpush.bf16.msrb.mxu2 %v1528_v20  ;;  %746 = vmatpush.bf16.msrb.mxu1 %v1520_v22  ;;  %v392_v9 = vpack.c.bf16 %v328_v6, %v324_v5  ;;  %v220_v10 = vld [vmem:[%s1742_s9 + $0x80] sm:$0xff]  ;;  %v334_v20 = vpack.c.bf16 %v210_v16, %v206_v15  ;;  %v249_v5 = vld [vmem:[%s1742_s9 + $0x168] sm:$0xff]  ;;  %v246_v6 = vld [vmem:[%s1742_s9 + $0x150] sm:$0xff] }
  0x31   : > { %924 = vmatpush.bf16.msrb.mxu3 %v1536_v21  ;;  %v224_v11 = vld [vmem:[%s1742_s9 + $0xa0] sm:$0xff]  ;;  %v335_v21 = vpack.c.bf16 %v211_v18, %v207_v17 }
  0x32   : > { %v340_v12 = vpack.c.bf16 %v224_v11, %v220_v10  ;;  %v228_v22 = vld [vmem:[%s1742_s9 + $0xc0] sm:$0xff] }
  0x33   : > { %v1542_v16 = vld [vmem:[%s2108_s3 + $0x20] sm:$0xff] }
  0x34   : > { %836 = vmatpush.bf16.msrb.mxu2 %v1527_v23  ;;  %747 = vmatpush.bf16.msrb.mxu1 %v1519_v25  ;;  %v232_v23 = vld [vmem:[%s1742_s9 + $0xe0] sm:$0xff]  ;;  %v213_v25 = vld [vmem:[%s1742_s9 + $0x48] sm:$0xff] }
  0x35   : > { %925 = vmatpush.bf16.msrb.mxu3 %v1535_v24  ;;  %v344_v24 = vpack.c.bf16 %v232_v23, %v228_v22  ;;  %v257_v22 = vld [vmem:[%s1742_s9 + $0x1a8] sm:$0xff]  ;;  %v254_v23 = vld [vmem:[%s1742_s9 + $0x190] sm:$0xff] }
  0x38   : > { %837 = vmatpush.bf16.msrb.mxu2 %v1526_v26  ;;  %748 = vmatpush.bf16.msrb.mxu1 %v1518_v28  ;;  %v217_v26 = vld [vmem:[%s1742_s9 + $0x68] sm:$0xff]  ;;  %v218_v28 = vld [vmem:[%s1742_s9 + $0x70] sm:$0xff] }
  0x39   : > { %926 = vmatpush.bf16.msrb.mxu3 %v1534_v27  ;;  %v214_v27 = vld [vmem:[%s1742_s9 + $0x50] sm:$0xff]  ;;  %v337_v31 = vpack.c.bf16 %v217_v26, %v213_v25  ;;  %v255_v25 = vld [vmem:[%s1742_s9 + $0x198] sm:$0xff] }
  0x3a   : > { %v338_v32 = vpack.c.bf16 %v218_v28, %v214_v27  ;;  %v259_v26 = vld [vmem:[%s1742_s9 + $0x1b8] sm:$0xff] }
  0x3b   : > { %689 = vmatmul.bf16.gmra.mxu1 %v352_v38  ;;  %709 = vmatmul.bf16.gmra.mxu2 %v368_v39  ;;  %v223_v38 = vld [vmem:[%s1742_s9 + $0x98] sm:$0xff] }
  0x3c   : > { %838 = vmatpush.bf16.msrb.mxu2 %v1525_v35  ;;  %749 = vmatpush.bf16.msrb.mxu1 %v1517_v37  ;;  %v225_v35 = vld [vmem:[%s1742_s9 + $0xa8] sm:$0xff]  ;;  %v226_v37 = vld [vmem:[%s1742_s9 + $0xb0] sm:$0xff]  ;;  %v227_v39 = vld [vmem:[%s1742_s9 + $0xb8] sm:$0xff] }
  0x3d   : > { %927 = vmatpush.bf16.msrb.mxu3 %v1533_v36  ;;  %669 = vmatmul.bf16.gmra.mxu0 %v336_v0  ;;  %v222_v36 = vld [vmem:[%s1742_s9 + $0x90] sm:$0xff] }
  0x3e   : > { %729 = vmatmul.bf16.gmra.mxu3 %v384_v40  ;;  %v341_v40 = vpack.c.bf16 %v225_v35, %v221_v34 }
  0x40   : > { %839 = vmatpush.bf16.msrb.mxu2 %v1524_v41  ;;  %750 = vmatpush.bf16.msrb.mxu1 %v1516_v43  ;;  %v342_v41 = vpack.c.bf16 %v226_v37, %v222_v36  ;;  %v229_v43 = vld [vmem:[%s1742_s9 + $0xc8] sm:$0xff] }
  0x41   : > { %928 = vmatpush.bf16.msrb.mxu3 %v1532_v42  ;;  %v343_v42 = vpack.c.bf16 %v227_v39, %v223_v38  ;;  %v261_v37 = vld [vmem:[%s1742_s9 + $0x1c8] sm:$0xff] }
  0x42   : > { %v1539_v38 = vld [vmem:[%s2108_s3 + $0x8] sm:$0xff] }
  0x43   : > { %v265_v39 = vld [vmem:[%s1742_s9 + $0x1e8] sm:$0xff] }
  0x44   : > { %840 = vmatpush.bf16.msrb.mxu2 %v1523_v44  ;;  %751 = vmatpush.bf16.msrb.mxu1 %v1515_v48  ;;  %v233_v44 = vld [vmem:[%s1742_s9 + $0xe8] sm:$0xff]  ;;  %v235_v48 = vld [vmem:[%s1742_s9 + $0xf8] sm:$0xff] }
  0x45   : > { %929 = vmatpush.bf16.msrb.mxu3 %v1531_v47  ;;  %v231_v47 = vld [vmem:[%s1742_s9 + $0xd8] sm:$0xff]  ;;  %v345_v49 = vpack.c.bf16 %v233_v44, %v229_v43 }
  0x46   : > { %v267_v43 = vld [vmem:[%s1742_s9 + $0x1f8] sm:$0xff] }
  0x48   : > { %841 = vmatpush.bf16.msrb.mxu2 %v1522_v50  ;;  %752 = vmatpush.bf16.msrb.mxu1 %v1514_v52  ;;  %v346_v50 = vpack.c.bf16 %v234_v46, %v230_v45  ;;  %v1545_v52 = vld [vmem:[%s2108_s3 + $0x38] sm:$0xff]  ;;  %v361_v46 = vpack.c.bf16 %v265_v39, %v261_v37 }
  0x49   : > { %930 = vmatpush.bf16.msrb.mxu3 %v1530_v51  ;;  %v347_v51 = vpack.c.bf16 %v235_v48, %v231_v47  ;;  %1124 = vmatpush.bf16.msrb.mxu0 %v1545_v52 }
  0x4b   : > { %694 = vmatmul.bf16.gmra.mxu1 %v356_v59  ;;  %714 = vmatmul.bf16.gmra.mxu2 %v372_v60  ;;  %v349_v59 = vpack.c.bf16 %v241_v54, %v237_v53  ;;  %v350_v60 = vpack.c.bf16 %v242_v56, %v238_v55  ;;  %v269_v55 = vld [vmem:[%s1742_s9 + $0x208] sm:$0xff] }
  0x4d   : > { %674 = vmatmul.bf16.gmra.mxu0 %v340_v12  ;;  %v353_v12 = vpack.c.bf16 %v249_v5, %v245_v4  ;;  %v365_v4 = vpack.c.bf16 %v273_v57, %v269_v55 }
  0x4e   : > { %734 = vmatmul.bf16.gmra.mxu3 %v388_v61  ;;  %1125 = vmatpush.bf16.msrb.mxu0 %v1544_v63 }
  0x52   : > { %1126 = vmatpush.bf16.msrb.mxu0 %v1543_v3 }
  0x56   : > { %1127 = vmatpush.bf16.msrb.mxu0 %v1542_v16 }
  0x5b   : > { %699 = vmatmul.bf16.gmra.mxu1 %v360_v7  ;;  %719 = vmatmul.bf16.gmra.mxu2 %v376_v8  ;;  %v250_v7 = vld [vmem:[%s1742_s9 + $0x170] sm:$0xff]  ;;  %v247_v8 = vld [vmem:[%s1742_s9 + $0x158] sm:$0xff] }
  0x5c   : > { %v354_v13 = vpack.c.bf16 %v250_v7, %v246_v6 }
  0x5d   : > { %679 = vmatmul.bf16.gmra.mxu0 %v344_v24  ;;  %v258_v24 = vld [vmem:[%s1742_s9 + $0x1b0] sm:$0xff] }
  0x5e   : > { %739 = vmatmul.bf16.gmra.mxu3 %v392_v9  ;;  %v251_v9 = vld [vmem:[%s1742_s9 + $0x178] sm:$0xff]  ;;  %v358_v30 = vpack.c.bf16 %v258_v24, %v254_v23  ;;  %v277_v23 = vld [vmem:[%s1742_s9 + $0x248] sm:$0xff] }
  0x5f   : > { %v355_v15 = vpack.c.bf16 %v251_v9, %v247_v8  ;;  %v1980_v8 = vld [vmem:[%s2107_s2] ss:$0 sm:$0xff]  ;;  %v281_v24 = vld [vmem:[%s1742_s9 + $0x268] sm:$0xff] }
  0x6b   : > { %753 = vmatmul.bf16.vlgmr.msrb.gmra.mxu1 %v333_v19  ;;  %842 = vmatmul.bf16.vlgmr.msrb.gmra.mxu2 %v334_v20  ;;  %v1541_v20 = vld [vmem:[%s2108_s3 + $0x18] sm:$0xff] }
  0x6c   : > { %1128 = vmatpush.bf16.msrb.mxu0 %v1541_v20 }
  0x6e   : > { %931 = vmatmul.bf16.vlgmr.msrb.gmra.mxu3 %v335_v21  ;;  %v253_v21 = vld [vmem:[%s1742_s9 + $0x188] sm:$0xff] }
  0x6f   : > { %v357_v29 = vpack.c.bf16 %v257_v22, %v253_v21 }
  0x7b   : > { %758 = vmatmul.bf16.gmra.mxu1 %v337_v31  ;;  %847 = vmatmul.bf16.gmra.mxu2 %v338_v32  ;;  %v359_v32 = vpack.c.bf16 %v259_v26, %v255_v25  ;;  %v278_v25 = vld [vmem:[%s1742_s9 + $0x250] sm:$0xff] }
  0x7c   : > { %v282_v26 = vld [vmem:[%s1742_s9 + $0x270] sm:$0xff] }
  0x7e   : > { %936 = vmatmul.bf16.gmra.mxu3 %v339_v33  ;;  %v1540_v33 = vld [vmem:[%s2108_s3 + $0x10] sm:$0xff] }
  0x7f   : > { %1129 = vmatpush.bf16.msrb.mxu0 %v1540_v33 }
  0x83   : > { %1130 = vmatpush.bf16.msrb.mxu0 %v1539_v38 }
  0x8b   : > { %763 = vmatmul.bf16.gmra.mxu1 %v341_v40  ;;  %852 = vmatmul.bf16.gmra.mxu2 %v342_v41  ;;  %v262_v40 = vld [vmem:[%s1742_s9 + $0x1d0] sm:$0xff] }
  0x8c   : > { %v266_v41 = vld [vmem:[%s1742_s9 + $0x1f0] sm:$0xff] }
  0x8d   : > { %v362_v47 = vpack.c.bf16 %v266_v41, %v262_v40  ;;  %v369_v40 = vpack.c.bf16 %v281_v24, %v277_v23  ;;  %v370_v41 = vpack.c.bf16 %v282_v26, %v278_v25 }
  0x8e   : > { %941 = vmatmul.bf16.gmra.mxu3 %v343_v42  ;;  %v263_v42 = vld [vmem:[%s1742_s9 + $0x1d8] sm:$0xff] }
  0x9b   : > { %768 = vmatmul.bf16.gmra.mxu1 %v345_v49  ;;  %857 = vmatmul.bf16.gmra.mxu2 %v346_v50  ;;  %v363_v49 = vpack.c.bf16 %v267_v43, %v263_v42 }
  0x9e   : > { %946 = vmatmul.bf16.gmra.mxu3 %v347_v51  ;;  %v1538_v51 = vld [vmem:[%s2108_s3] sm:$0xff] }
  0x9f   : > { %1131 = vmatpush.bf16.msrb.mxu0 %v1538_v51 }
  0xa8   : > { %v1884_v61 = vpop.f32.mrf.mxu1 }
  0xaa   : > { %v665_v50 = vpop.f32.mrf.mxu0 }
  0xab   : > { %773 = vmatmul.bf16.gmra.mxu1 %v349_v59  ;;  %862 = vmatmul.bf16.gmra.mxu2 %v350_v60  ;;  %v274_v59 = vld [vmem:[%s1742_s9 + $0x230] sm:$0xff]  ;;  %v271_v60 = vld [vmem:[%s1742_s9 + $0x218] sm:$0xff]  ;;  %v666_v9 = vadd.f32 %v1980_v8, %v665_v50 }
  0xac   : > { %v366_v5 = vpack.c.bf16 %v274_v59, %v270_v58 }
  0xae   : > { %951 = vmatmul.bf16.gmra.mxu3 %v351_v62  ;;  %v1889_v0 = vpop.f32.mrf.mxu2  ;;  %v275_v62 = vld [vmem:[%s1742_s9 + $0x238] sm:$0xff] }
  0xaf   : > { %v367_v7 = vpack.c.bf16 %v275_v62, %v271_v60 }
  0xb0   : > { %v1893_v2 = vpop.f32.mrf.mxu1 }
  0xb1   : > { %v1891_v1 = vpop.f32.mrf.mxu3 }
  0xb2   : > { %v667_v56 = vpop.f32.mrf.mxu0 }
  0xb3   : > { %v668_v21 = vadd.f32 %v1980_v8, %v667_v56 }
  0xb6   : > { %v1904_v10 = vpop.f32.mrf.mxu2 }
  0xb8   : > { %v1908_v14 = vpop.f32.mrf.mxu1 }
  0xb9   : > { %v1906_v11 = vpop.f32.mrf.mxu3 }
  0xbb   : > { %778 = vmatmul.bf16.gmra.mxu1 %v353_v12  ;;  %867 = vmatmul.bf16.gmra.mxu2 %v354_v13  ;;  %v670_v13 = vpop.f32.mrf.mxu0 }
  0xbc   : > { %v671_v50 = vadd.f32 %v1980_v8, %v670_v13  ;;  %v287_v13 = vld [vmem:[%s1742_s9 + $0x298] sm:$0xff] }
  0xbe   : > { %956 = vmatmul.bf16.gmra.mxu3 %v355_v15  ;;  %v1913_v17 = vpop.f32.mrf.mxu2 }
  0xc0   : > { %v1917_v19 = vpop.f32.mrf.mxu1 }
  0xc1   : > { %v1915_v18 = vpop.f32.mrf.mxu3 }
  0xc3   : > { %v672_v43 = vpop.f32.mrf.mxu0 }
  0xc4   : > { %v673_v62 = vadd.f32 %v1980_v8, %v672_v43 }
  0xc6   : > { %v1928_v27 = vpop.f32.mrf.mxu2 }
  0xc8   : > { %v1932_v31 = vpop.f32.mrf.mxu1 }
  0xc9   : > { %v1930_v28 = vpop.f32.mrf.mxu3 }
  0xcb   : > { %783 = vmatmul.bf16.gmra.mxu1 %v357_v29  ;;  %872 = vmatmul.bf16.gmra.mxu2 %v358_v30  ;;  %v279_v30 = vld [vmem:[%s1742_s9 + $0x258] sm:$0xff]  ;;  %v675_v60 = vpop.f32.mrf.mxu0 }
  0xce   : > { %961 = vmatmul.bf16.gmra.mxu3 %v359_v32  ;;  %v1937_v34 = vpop.f32.mrf.mxu2  ;;  %v283_v32 = vld [vmem:[%s1742_s9 + $0x278] sm:$0xff] }
  0xd0   : > { %v1941_v36 = vpop.f32.mrf.mxu1 }
  0xd1   : > { %v1939_v35 = vpop.f32.mrf.mxu3 }
  0xd6   : > { %v1952_v44 = vpop.f32.mrf.mxu2 }
  0xd8   : > { %v1956_v48 = vpop.f32.mrf.mxu1 }
  0xd9   : > { %v1954_v45 = vpop.f32.mrf.mxu3 }
  0xdb   : > { %788 = vmatmul.bf16.gmra.mxu1 %v361_v46  ;;  %877 = vmatmul.bf16.gmra.mxu2 %v362_v47  ;;  %v371_v46 = vpack.c.bf16 %v283_v32, %v279_v30  ;;  %v676_v32 = vadd.f32 %v1980_v8, %v675_v60 }
  0xde   : > { %966 = vmatmul.bf16.gmra.mxu3 %v363_v49  ;;  %v1961_v52 = vpop.f32.mrf.mxu2 }
  0xe0   : > { %v1965_v54 = vpop.f32.mrf.mxu1 }
  0xe1   : > { %v1963_v53 = vpop.f32.mrf.mxu3 }
  0xe6   : > { %v1973_v63 = vpop.f32.mrf.mxu2 }
  0xe8   : > { %v754_v6 = vpop.f32.mrf.mxu1 }
  0xe9   : > { %v1975_v3 = vpop.f32.mrf.mxu3  ;;  %v755_v15 = vadd.f32 %v754_v6, %v666_v9  ;;  %v289_v6 = vld [vmem:[%s1742_s9 + $0x2a8] sm:$0xff]  ;;  %v290_v9 = vld [vmem:[%s1742_s9 + $0x2b0] sm:$0xff] }
  0xeb   : > { %793 = vmatmul.bf16.gmra.mxu1 %v365_v4  ;;  %882 = vmatmul.bf16.gmra.mxu2 %v366_v5  ;;  %v285_v5 = vld [vmem:[%s1742_s9 + $0x288] sm:$0xff] }
  0xec   : > { %v373_v23 = vpack.c.bf16 %v289_v6, %v285_v5 }
  0xee   : > { %971 = vmatmul.bf16.gmra.mxu3 %v367_v7  ;;  %v843_v12 = vpop.f32.mrf.mxu2  ;;  %v286_v7 = vld [vmem:[%s1742_s9 + $0x290] sm:$0xff] }
  0xef   : > { %v844_v22 = vadd.f32 %v843_v12, %v755_v15  ;;  %v291_v15 = vld [vmem:[%s1742_s9 + $0x2b8] sm:$0xff]  ;;  %v374_v24 = vpack.c.bf16 %v290_v9, %v286_v7 }
  0xf0   : > { %v756_v20 = vpop.f32.mrf.mxu1  ;;  %v375_v26 = vpack.c.bf16 %v291_v15, %v287_v13 }
  0xf1   : > { %v932_v16 = vpop.f32.mrf.mxu3  ;;  %v757_v29 = vadd.f32 %v756_v20, %v668_v21 }
  0xf2   : > { %v933_v37 = vadd.f32 %v932_v16, %v844_v22 }
  0xf4   : > { %v1012_v49 = vmax.f32 %v933_v37, 0.0  ;;  %v677_v37 = vpop.f32.mrf.mxu0 }
  0xf5   : > { %v678_v43 = vadd.f32 %v1980_v8, %v677_v37  ;;  %v306_v37 = vld [vmem:[%s1742_s9 + $0x330] sm:$0xff] }
  0xf6   : > { %v845_v33 = vpop.f32.mrf.mxu2 }
  0xf7   : > { %v846_v38 = vadd.f32 %v845_v33, %v757_v29 }
  0xf8   : > { %v759_v42 = vpop.f32.mrf.mxu1 }
  0xf9   : > { %v934_v39 = vpop.f32.mrf.mxu3  ;;  %v760_v57 = vadd.f32 %v759_v42, %v671_v50  ;;  %v294_v50 = vld [vmem:[%s1742_s9 + $0x2d0] sm:$0xff] }
  0xfa   : > { %v935_v47 = vadd.f32 %v934_v39, %v846_v38 }
  0xfb   : > { %798 = vmatmul.bf16.gmra.mxu1 %v369_v40  ;;  %887 = vmatmul.bf16.gmra.mxu2 %v370_v41 }
  0xfc   : > { %v1013_v51 = vmax.f32 %v935_v47, 0.0  ;;  %v293_v47 = vld [vmem:[%s1742_s9 + $0x2c8] sm:$0xff] }
  0xfe   : > { %976 = vmatmul.bf16.gmra.mxu3 %v371_v46  ;;  %v1044_v55 = vpack.c.bf16 %v1013_v51, %v1012_v49  ;;  %v848_v56 = vpop.f32.mrf.mxu2  ;;  %v297_v49 = vld [vmem:[%s1742_s9 + $0x2e8] sm:$0xff]  ;;  %v298_v51 = vld [vmem:[%s1742_s9 + $0x2f0] sm:$0xff] }
  0xff   : > { %v849_v4 = vadd.f32 %v848_v56, %v760_v57  ;;  %v295_v56 = vld [vmem:[%s1742_s9 + $0x2d8] sm:$0xff]  ;;  %v377_v5 = vpack.c.bf16 %v297_v49, %v293_v47  ;;  %v378_v6 = vpack.c.bf16 %v298_v51, %v294_v50 }
 0x100   : > { %1132 = vmatmul.bf16.vlgmr.msrb.gmra.mxu0 %v1044_v55  ;;  %v761_v59 = vpop.f32.mrf.mxu1  ;;  %v299_v57 = vld [vmem:[%s1742_s9 + $0x2f8] sm:$0xff] }
 0x101   : > { %v937_v58 = vpop.f32.mrf.mxu3  ;;  %v762_v12 = vadd.f32 %v761_v59, %v673_v62  ;;  %v379_v9 = vpack.c.bf16 %v299_v57, %v295_v56 }
 0x102   : > { %v938_v20 = vadd.f32 %v937_v58, %v849_v4  ;;  %v680_v58 = vpop.f32.mrf.mxu0 }
 0x103   : > { %v681_v15 = vadd.f32 %v1980_v8, %v680_v58 }
 0x104   : > { %v1014_v30 = vmax.f32 %v938_v20, 0.0 }
 0x106   : > { %v850_v16 = vpop.f32.mrf.mxu2 }
 0x107   : > { %v851_v21 = vadd.f32 %v850_v16, %v762_v12 }
 0x108   : > { %v764_v25 = vpop.f32.mrf.mxu1 }
 0x109   : > { %v939_v22 = vpop.f32.mrf.mxu3  ;;  %v765_v40 = vadd.f32 %v764_v25, %v676_v32  ;;  %v305_v32 = vld [vmem:[%s1742_s9 + $0x328] sm:$0xff] }
 0x10a   : > { %v940_v29 = vadd.f32 %v939_v22, %v851_v21 }
 0x10b   : > { %803 = vmatmul.bf16.gmra.mxu1 %v373_v23  ;;  %892 = vmatmul.bf16.gmra.mxu2 %v374_v24  ;;  %v682_v24 = vpop.f32.mrf.mxu0 }
 0x10c   : > { %v1015_v33 = vmax.f32 %v940_v29, 0.0 }
 0x10e   : > { %981 = vmatmul.bf16.gmra.mxu3 %v375_v26  ;;  %v1045_v38 = vpack.c.bf16 %v1015_v33, %v1014_v30  ;;  %v853_v39 = vpop.f32.mrf.mxu2  ;;  %v683_v26 = vadd.f32 %v1980_v8, %v682_v24  ;;  %v301_v30 = vld [vmem:[%s1742_s9 + $0x308] sm:$0xff]  ;;  %v302_v33 = vld [vmem:[%s1742_s9 + $0x310] sm:$0xff] }
 0x10f   : > { %v854_v46 = vadd.f32 %v853_v39, %v765_v40  ;;  %v303_v39 = vld [vmem:[%s1742_s9 + $0x318] sm:$0xff]  ;;  %v381_v47 = vpack.c.bf16 %v305_v32, %v301_v30  ;;  %v382_v49 = vpack.c.bf16 %v306_v37, %v302_v33 }
 0x110   : > { %1137 = vmatmul.bf16.gmra.mxu0 %v1045_v38  ;;  %v766_v42 = vpop.f32.mrf.mxu1  ;;  %v307_v40 = vld [vmem:[%s1742_s9 + $0x338] sm:$0xff] }
 0x111   : > { %v942_v41 = vpop.f32.mrf.mxu3  ;;  %v767_v55 = vadd.f32 %v766_v42, %v678_v43  ;;  %v383_v51 = vpack.c.bf16 %v307_v40, %v303_v39  ;;  %v691_v39 = vadd.f32 %v1980_v8, %v1908_v14 }
 0x112   : > { %v943_v60 = vadd.f32 %v942_v41, %v854_v46 }
 0x114   : > { %v1016_v13 = vmax.f32 %v943_v60, 0.0  ;;  %v686_v60 = vadd.f32 %v1980_v8, %v1884_v61 }
 0x116   : > { %v855_v59 = vpop.f32.mrf.mxu2 }
 0x117   : > { %v856_v62 = vadd.f32 %v855_v59, %v767_v55 }
 0x118   : > { %v769_v7 = vpop.f32.mrf.mxu1 }
 0x119   : > { %v944_v4 = vpop.f32.mrf.mxu3  ;;  %v770_v22 = vadd.f32 %v769_v7, %v681_v15  ;;  %v314_v15 = vld [vmem:[%s1742_s9 + $0x370] sm:$0xff] }
 0x11a   : > { %v945_v12 = vadd.f32 %v944_v4, %v856_v62 }
 0x11b   : > { %808 = vmatmul.bf16.gmra.mxu1 %v377_v5  ;;  %897 = vmatmul.bf16.gmra.mxu2 %v378_v6  ;;  %v688_v6 = vadd.f32 %v1980_v8, %v1893_v2 }
 0x11c   : > { %v1017_v16 = vmax.f32 %v945_v12, 0.0  ;;  %v313_v12 = vld [vmem:[%s1742_s9 + $0x368] sm:$0xff] }
 0x11e   : > { %986 = vmatmul.bf16.gmra.mxu3 %v379_v9  ;;  %v1046_v20 = vpack.c.bf16 %v1017_v16, %v1016_v13  ;;  %v858_v21 = vpop.f32.mrf.mxu2  ;;  %v309_v9 = vld [vmem:[%s1742_s9 + $0x348] sm:$0xff]  ;;  %v310_v13 = vld [vmem:[%s1742_s9 + $0x350] sm:$0xff] }
 0x11f   : > { %v859_v29 = vadd.f32 %v858_v21, %v770_v22  ;;  %v315_v21 = vld [vmem:[%s1742_s9 + $0x378] sm:$0xff]  ;;  %v385_v61 = vpack.c.bf16 %v313_v12, %v309_v9 }
 0x120   : > { %1142 = vmatmul.bf16.gmra.mxu0 %v1046_v20  ;;  %v771_v25 = vpop.f32.mrf.mxu1  ;;  %v311_v20 = vld [vmem:[%s1742_s9 + $0x358] sm:$0xff] }
 0x121   : > { %v947_v23 = vpop.f32.mrf.mxu3  ;;  %v772_v38 = vadd.f32 %v771_v25, %v683_v26  ;;  %v386_v26 = vpack.c.bf16 %v314_v15, %v310_v13  ;;  %v387_v30 = vpack.c.bf16 %v315_v21, %v311_v20  ;;  %v696_v15 = vadd.f32 %v1980_v8, %v1932_v31 }
 0x122   : > { %v948_v42 = vadd.f32 %v947_v23, %v859_v29 }
 0x124   : > { %v1018_v56 = vmax.f32 %v948_v42, 0.0 }
 0x126   : > { %v860_v41 = vpop.f32.mrf.mxu2 }
 0x127   : > { %v861_v43 = vadd.f32 %v860_v41, %v772_v38 }
 0x128   : > { %v774_v50 = vpop.f32.mrf.mxu1 }
 0x129   : > { %v949_v46 = vpop.f32.mrf.mxu3  ;;  %v775_v5 = vadd.f32 %v774_v50, %v686_v60  ;;  %v318_v50 = vld [vmem:[%s1742_s9 + $0x390] sm:$0xff] }
 0x12a   : > { %v950_v55 = vadd.f32 %v949_v46, %v861_v43  ;;  %v693_v43 = vadd.f32 %v1980_v8, %v1917_v19 }
 0x12b   : > { %813 = vmatmul.bf16.gmra.mxu1 %v381_v47  ;;  %902 = vmatmul.bf16.gmra.mxu2 %v382_v49  ;;  %v317_v47 = vld [vmem:[%s1742_s9 + $0x388] sm:$0xff] }
 0x12c   : > { %v1019_v57 = vmax.f32 %v950_v55, 0.0  ;;  %v321_v49 = vld [vmem:[%s1742_s9 + $0x3a8] sm:$0xff] }
 0x12d   : > { %v389_v14 = vpack.c.bf16 %v321_v49, %v317_v47  ;;  %v701_v49 = vadd.f32 %v1980_v8, %v1956_v48  ;;  %v706_v48 = vadd.f32 %v1980_v8, %v1889_v0 }
 0x12e   : > { %991 = vmatmul.bf16.gmra.mxu3 %v383_v51  ;;  %v1047_v58 = vpack.c.bf16 %v1019_v57, %v1018_v56  ;;  %v863_v59 = vpop.f32.mrf.mxu2  ;;  %v322_v51 = vld [vmem:[%s1742_s9 + $0x3b0] sm:$0xff]  ;;  %v319_v56 = vld [vmem:[%s1742_s9 + $0x398] sm:$0xff] }
 0x12f   : > { %v864_v7 = vadd.f32 %v863_v59, %v775_v5  ;;  %v323_v57 = vld [vmem:[%s1742_s9 + $0x3b8] sm:$0xff] }
 0x130   : > { %1147 = vmatmul.bf16.gmra.mxu0 %v1047_v58  ;;  %v776_v4 = vpop.f32.mrf.mxu1 }
 0x131   : > { %v952_v62 = vpop.f32.mrf.mxu3  ;;  %v777_v16 = vadd.f32 %v776_v4, %v688_v6  ;;  %v390_v4 = vpack.c.bf16 %v322_v51, %v318_v50  ;;  %v391_v6 = vpack.c.bf16 %v323_v57, %v319_v56  ;;  %v703_v56 = vadd.f32 %v1980_v8, %v1965_v54 }
 0x132   : > { %v953_v23 = vadd.f32 %v952_v62, %v864_v7  ;;  %v708_v54 = vadd.f32 %v1980_v8, %v1904_v10 }
 0x134   : > { %v1020_v2 = vmax.f32 %v953_v23, 0.0 }
 0x136   : > { %v865_v22 = vpop.f32.mrf.mxu2 }
 0x137   : > { %v866_v24 = vadd.f32 %v865_v22, %v777_v16  ;;  %v698_v22 = vadd.f32 %v1980_v8, %v1941_v36 }
 0x138   : > { %v779_v29 = vpop.f32.mrf.mxu1 }
 0x139   : > { %v954_v25 = vpop.f32.mrf.mxu3  ;;  %v780_v42 = vadd.f32 %v779_v29, %v691_v39 }
 0x13a   : > { %v955_v32 = vadd.f32 %v954_v25, %v866_v24  ;;  %v325_v24 = vld [vmem:[%s1742_s9 + $0x3c8] sm:$0xff] }
 0x13b   : > { %818 = vmatmul.bf16.gmra.mxu1 %v385_v61  ;;  %907 = vmatmul.bf16.gmra.mxu2 %v386_v26  ;;  %v329_v25 = vld [vmem:[%s1742_s9 + $0x3e8] sm:$0xff]  ;;  %v326_v61 = vld [vmem:[%s1742_s9 + $0x3d0] sm:$0xff] }
 0x13c   : > { %v1021_v33 = vmax.f32 %v955_v32, 0.0  ;;  %v330_v26 = vld [vmem:[%s1742_s9 + $0x3f0] sm:$0xff]  ;;  %v331_v32 = vld [vmem:[%s1742_s9 + $0x3f8] sm:$0xff]  ;;  %v393_v31 = vpack.c.bf16 %v329_v25, %v325_v24 }
 0x13d   : > { %v394_v39 = vpack.c.bf16 %v330_v26, %v326_v61 }
 0x13e   : > { %996 = vmatmul.bf16.gmra.mxu3 %v387_v30  ;;  %v1048_v37 = vpack.c.bf16 %v1021_v33, %v1020_v2  ;;  %v868_v38 = vpop.f32.mrf.mxu2  ;;  %v327_v30 = vld [vmem:[%s1742_s9 + $0x3d8] sm:$0xff]  ;;  %s1342_s9 = sshll.u32 %s2111_s23, 2 }
 0x13f   : > { %v869_v46 = vadd.f32 %v868_v38, %v780_v42  ;;  %s2060_s11 = scalar_lea.vmem %s2109_s4, %s1342_s9 }
 0x140   : > { %1152 = vmatmul.bf16.gmra.mxu0 %v1048_v37  ;;  %v781_v41 = vpop.f32.mrf.mxu1 }
 0x141   : > { %v957_v40 = vpop.f32.mrf.mxu3  ;;  %v782_v55 = vadd.f32 %v781_v41, %v693_v43  ;;  %v395_v41 = vpack.c.bf16 %v331_v32, %v327_v30 }
 0x142   : > { %v958_v59 = vadd.f32 %v957_v40, %v869_v46 }
 0x144   : > { %v1022_v19 = vmax.f32 %v958_v59, 0.0 }
 0x146   : > { %v870_v58 = vpop.f32.mrf.mxu2 }
 0x147   : > { %v871_v60 = vadd.f32 %v870_v58, %v782_v55 }
 0x148   : > { %v784_v5 = vpop.f32.mrf.mxu1 }
 0x149   : > { %v959_v62 = vpop.f32.mrf.mxu3  ;;  %v785_v21 = vadd.f32 %v784_v5, %v696_v15 }
 0x14a   : > { %v960_v7 = vadd.f32 %v959_v62, %v871_v60 }
 0x14b   : > { %823 = vmatmul.bf16.gmra.mxu1 %v389_v14  ;;  %912 = vmatmul.bf16.gmra.mxu2 %v390_v4 }
 0x14c   : > { %v1023_v9 = vmax.f32 %v960_v7, 0.0 }
 0x14e   : > { %1001 = vmatmul.bf16.gmra.mxu3 %v391_v6  ;;  %v1049_v12 = vpack.c.bf16 %v1023_v9, %v1022_v19  ;;  %v873_v13 = vpop.f32.mrf.mxu2 }
 0x14f   : > { %v874_v23 = vadd.f32 %v873_v13, %v785_v21 }
 0x150   : > { %1157 = vmatmul.bf16.gmra.mxu0 %v1049_v12  ;;  %v786_v20 = vpop.f32.mrf.mxu1 }
 0x151   : > { %v962_v16 = vpop.f32.mrf.mxu3  ;;  %v787_v29 = vadd.f32 %v786_v20, %v698_v22 }
 0x152   : > { %v963_v33 = vadd.f32 %v962_v16, %v874_v23 }
 0x154   : > { %v1024_v43 = vmax.f32 %v963_v33, 0.0 }
 0x156   : > { %v875_v2 = vpop.f32.mrf.mxu2 }
 0x157   : > { %v876_v37 = vadd.f32 %v875_v2, %v787_v29  ;;  %v711_v2 = vadd.f32 %v1980_v8, %v1913_v17 }
 0x158   : > { %v789_v40 = vpop.f32.mrf.mxu1 }
 0x159   : > { %v964_v38 = vpop.f32.mrf.mxu3  ;;  %v790_v55 = vadd.f32 %v789_v40, %v701_v49 }
 0x15a   : > { %v965_v42 = vadd.f32 %v964_v38, %v876_v37  ;;  %v713_v38 = vadd.f32 %v1980_v8, %v1928_v27 }
 0x15b   : > { %828 = vmatmul.bf16.gmra.mxu1 %v393_v31  ;;  %917 = vmatmul.bf16.gmra.mxu2 %v394_v39 }
 0x15c   : > { %v1025_v46 = vmax.f32 %v965_v42, 0.0 }
 0x15e   : > { %1006 = vmatmul.bf16.gmra.mxu3 %v395_v41  ;;  %v1050_v36 = vpack.c.bf16 %v1025_v46, %v1024_v43  ;;  %v878_v47 = vpop.f32.mrf.mxu2 }
 0x15f   : > { %v879_v57 = vadd.f32 %v878_v47, %v790_v55 }
 0x160   : > { %1162 = vmatmul.bf16.gmra.mxu0 %v1050_v36  ;;  %v791_v51 = vpop.f32.mrf.mxu1 }
 0x161   : > { %v967_v50 = vpop.f32.mrf.mxu3  ;;  %v792_v58 = vadd.f32 %v791_v51, %v703_v56  ;;  %v716_v56 = vadd.f32 %v1980_v8, %v1937_v34 }
 0x162   : > { %v968_v60 = vadd.f32 %v967_v50, %v879_v57 }
 0x164   : > { %v1026_v6 = vmax.f32 %v968_v60, 0.0  ;;  %v718_v60 = vadd.f32 %v1980_v8, %v1952_v44  ;;  %v721_v44 = vadd.f32 %v1980_v8, %v1961_v52 }
 0x166   : > { %v880_v59 = vpop.f32.mrf.mxu2 }
 0x167   : > { %v881_v62 = vadd.f32 %v880_v59, %v792_v58 }
 0x168   : > { %v794_v4 = vpop.f32.mrf.mxu1 }
 0x169   : > { %v969_v14 = vpop.f32.mrf.mxu3  ;;  %v795_v15 = vadd.f32 %v794_v4, %v706_v48 }
 0x16a   : > { %v970_v5 = vadd.f32 %v969_v14, %v881_v62 }
 0x16c   : > { %v1027_v7 = vmax.f32 %v970_v5, 0.0 }
 0x16e   : > { %v1051_v19 = vpack.c.bf16 %v1027_v7, %v1026_v6  ;;  %v883_v9 = vpop.f32.mrf.mxu2 }
 0x16f   : > { %v884_v16 = vadd.f32 %v883_v9, %v795_v15 }
 0x170   : > { %1167 = vmatmul.bf16.gmra.mxu0 %v1051_v19  ;;  %v796_v13 = vpop.f32.mrf.mxu1 }
 0x171   : > { %v972_v12 = vpop.f32.mrf.mxu3  ;;  %v797_v20 = vadd.f32 %v796_v13, %v708_v54 }
 0x172   : > { %v973_v22 = vadd.f32 %v972_v12, %v884_v16 }
 0x174   : > { %v1028_v26 = vmax.f32 %v973_v22, 0.0 }
 0x176   : > { %v885_v21 = vpop.f32.mrf.mxu2 }
 0x177   : > { %v886_v23 = vadd.f32 %v885_v21, %v797_v20 }
 0x178   : > { %v799_v25 = vpop.f32.mrf.mxu1 }
 0x179   : > { %v974_v24 = vpop.f32.mrf.mxu3  ;;  %v800_v37 = vadd.f32 %v799_v25, %v711_v2 }
 0x17a   : > { %v975_v61 = vadd.f32 %v974_v24, %v886_v23  ;;  %v723_v23 = vadd.f32 %v1980_v8, %v1973_v63  ;;  %v726_v63 = vadd.f32 %v1980_v8, %v1891_v1 }
 0x17c   : > { %v1029_v29 = vmax.f32 %v975_v61, 0.0 }
 0x17d   : > { %v1133_v30 = vpop.f32.mrf.mxu0 }
 0x17e   : > { %v1052_v0 = vpack.c.bf16 %v1029_v29, %v1028_v26  ;;  %v888_v32 = vpop.f32.mrf.mxu2 }
 0x17f   : > { %v889_v31 = vadd.f32 %v888_v32, %v800_v37 }
 0x180   : > { %1172 = vmatmul.bf16.gmra.mxu0 %v1052_v0  ;;  %v801_v10 = vpop.f32.mrf.mxu1 }
 0x181   : > { %v977_v33 = vpop.f32.mrf.mxu3  ;;  %v802_v40 = vadd.f32 %v801_v10, %v713_v38 }
 0x182   : > { %v978_v17 = vadd.f32 %v977_v33, %v889_v31 }
 0x184   : > { %v1030_v49 = vmax.f32 %v978_v17, 0.0 }
 0x185   : > { %v1135_v39 = vpop.f32.mrf.mxu0 }
 0x186   : > { %v1549_v41 = vpack.c.bf16 %v1135_v39, %v1133_v30  ;;  %v890_v42 = vpop.f32.mrf.mxu2 }
 0x187   : > { %v891_v43 = vadd.f32 %v890_v42, %v802_v40  ;;  %v728_v42 = vadd.f32 %v1980_v8, %v1906_v11  ;;  %v731_v11 = vadd.f32 %v1980_v8, %v1915_v18 }
 0x188   : > { %1550 = vst [vmem:[%s2060_s11] sm:$0xff] %v1549_v41   ;;  %v804_v36 = vpop.f32.mrf.mxu1 }
 0x189   : > { %v979_v46 = vpop.f32.mrf.mxu3  ;;  %v805_v59 = vadd.f32 %v804_v36, %v716_v56 }
 0x18a   : > { %v980_v47 = vadd.f32 %v979_v46, %v891_v43 }
 0x18c   : > { %v1031_v50 = vmax.f32 %v980_v47, 0.0 }
 0x18d   : > { %v1138_v27 = vpop.f32.mrf.mxu0 }
 0x18e   : > { %v1053_v51 = vpack.c.bf16 %v1031_v50, %v1030_v49  ;;  %v893_v55 = vpop.f32.mrf.mxu2 }
 0x18f   : > { %v894_v62 = vadd.f32 %v893_v55, %v805_v59 }
 0x190   : > { %1177 = vmatmul.bf16.gmra.mxu0 %v1053_v51  ;;  %v806_v58 = vpop.f32.mrf.mxu1 }
 0x191   : > { %v982_v57 = vpop.f32.mrf.mxu3  ;;  %v807_v4 = vadd.f32 %v806_v58, %v718_v60 }
 0x192   : > { %v983_v7 = vadd.f32 %v982_v57, %v894_v62 }
 0x194   : > { %v1032_v13 = vmax.f32 %v983_v7, 0.0 }
 0x195   : > { %v1140_v14 = vpop.f32.mrf.mxu0 }
 0x196   : > { %v1554_v5 = vpack.c.bf16 %v1140_v14, %v1138_v27  ;;  %v895_v6 = vpop.f32.mrf.mxu2 }
 0x197   : > { %v896_v19 = vadd.f32 %v895_v6, %v807_v4  ;;  %v733_v4 = vadd.f32 %v1980_v8, %v1930_v28  ;;  %v736_v28 = vadd.f32 %v1980_v8, %v1939_v35 }
 0x198   : > { %1626 = vst [vmem:[%s2060_s11 + $0x8] sm:$0xff] %v1554_v5   ;;  %v809_v48 = vpop.f32.mrf.mxu1 }
 0x199   : > { %v984_v9 = vpop.f32.mrf.mxu3  ;;  %v810_v22 = vadd.f32 %v809_v48, %v721_v44 }
 0x19a   : > { %v985_v12 = vadd.f32 %v984_v9, %v896_v19 }
 0x19c   : > { %v1033_v34 = vmax.f32 %v985_v12, 0.0 }
 0x19d   : > { %v1143_v15 = vpop.f32.mrf.mxu0 }
 0x19e   : > { %v1054_v54 = vpack.c.bf16 %v1033_v34, %v1032_v13  ;;  %v898_v16 = vpop.f32.mrf.mxu2 }
 0x19f   : > { %v899_v24 = vadd.f32 %v898_v16, %v810_v22 }
 0x1a0   : > { %1182 = vmatmul.bf16.gmra.mxu0 %v1054_v54  ;;  %v811_v21 = vpop.f32.mrf.mxu1 }
 0x1a1   : > { %v987_v20 = vpop.f32.mrf.mxu3  ;;  %v812_v61 = vadd.f32 %v811_v21, %v723_v23 }
 0x1a2   : > { %v988_v30 = vadd.f32 %v987_v20, %v899_v24  ;;  %v738_v24 = vadd.f32 %v1980_v8, %v1954_v45  ;;  %v741_v45 = vadd.f32 %v1980_v8, %v1963_v53 }
 0x1a4   : > { %v1034_v10 = vmax.f32 %v988_v30, 0.0 }
 0x1a5   : > { %v1145_v25 = vpop.f32.mrf.mxu0 }
 0x1a6   : > { %v1559_v26 = vpack.c.bf16 %v1145_v25, %v1143_v15  ;;  %v900_v29 = vpop.f32.mrf.mxu2 }
 0x1a7   : > { %v901_v0 = vadd.f32 %v900_v29, %v812_v61 }
 0x1a8   : > { %1627 = vst [vmem:[%s2060_s11 + $0x10] sm:$0xff] %v1559_v26   ;;  %v814_v2 = vpop.f32.mrf.mxu1 }
 0x1a9   : > { %v989_v32 = vpop.f32.mrf.mxu3  ;;  %v815_v41 = vadd.f32 %v814_v2, %v726_v63 }
 0x1aa   : > { %v990_v33 = vadd.f32 %v989_v32, %v901_v0 }
 0x1ac   : > { %v1035_v52 = vmax.f32 %v990_v33, 0.0 }
 0x1ad   : > { %v1148_v37 = vpop.f32.mrf.mxu0 }
 0x1ae   : > { %v1055_v38 = vpack.c.bf16 %v1035_v52, %v1034_v10  ;;  %v903_v31 = vpop.f32.mrf.mxu2 }
 0x1af   : > { %v904_v17 = vadd.f32 %v903_v31, %v815_v41  ;;  %v743_v41 = vadd.f32 %v1980_v8, %v1975_v3 }
 0x1b0   : > { %1187 = vmatmul.bf16.gmra.mxu0 %v1055_v38  ;;  %v816_v40 = vpop.f32.mrf.mxu1 }
 0x1b1   : > { %v992_v39 = vpop.f32.mrf.mxu3  ;;  %v817_v46 = vadd.f32 %v816_v40, %v728_v42 }
 0x1b2   : > { %v993_v49 = vadd.f32 %v992_v39, %v904_v17 }
 0x1b4   : > { %v1036_v56 = vmax.f32 %v993_v49, 0.0 }
 0x1b5   : > { %v1150_v43 = vpop.f32.mrf.mxu0 }
 0x1b6   : > { %v1564_v36 = vpack.c.bf16 %v1150_v43, %v1148_v37  ;;  %v905_v47 = vpop.f32.mrf.mxu2 }
 0x1b7   : > { %v906_v50 = vadd.f32 %v905_v47, %v817_v46 }
 0x1b8   : > { %1628 = vst [vmem:[%s2060_s11 + $0x18] sm:$0xff] %v1564_v36   ;;  %v819_v51 = vpop.f32.mrf.mxu1 }
 0x1b9   : > { %v994_v27 = vpop.f32.mrf.mxu3  ;;  %v820_v14 = vadd.f32 %v819_v51, %v731_v11 }
 0x1ba   : > { %v995_v55 = vadd.f32 %v994_v27, %v906_v50 }
 0x1bc   : > { %v1037_v1 = vmax.f32 %v995_v55, 0.0 }
 0x1bd   : > { %v1153_v57 = vpop.f32.mrf.mxu0 }
 0x1be   : > { %v1056_v58 = vpack.c.bf16 %v1037_v1, %v1036_v56  ;;  %v908_v59 = vpop.f32.mrf.mxu2 }
 0x1bf   : > { %v909_v5 = vadd.f32 %v908_v59, %v820_v14 }
 0x1c0   : > { %1192 = vmatmul.bf16.gmra.mxu0 %v1056_v58  ;;  %v821_v62 = vpop.f32.mrf.mxu1 }
 0x1c1   : > { %v997_v60 = vpop.f32.mrf.mxu3  ;;  %v822_v7 = vadd.f32 %v821_v62, %v733_v4 }
 0x1c2   : > { %v998_v48 = vadd.f32 %v997_v60, %v909_v5 }
 0x1c4   : > { %v1038_v54 = vmax.f32 %v998_v48, 0.0 }
 0x1c5   : > { %v1155_v6 = vpop.f32.mrf.mxu0 }
 0x1c6   : > { %v1569_v19 = vpack.c.bf16 %v1155_v6, %v1153_v57  ;;  %v910_v9 = vpop.f32.mrf.mxu2 }
 0x1c7   : > { %v911_v12 = vadd.f32 %v910_v9, %v822_v7 }
 0x1c8   : > { %1629 = vst [vmem:[%s2060_s11 + $0x20] sm:$0xff] %v1569_v19   ;;  %v824_v34 = vpop.f32.mrf.mxu1 }
 0x1c9   : > { %v999_v13 = vpop.f32.mrf.mxu3  ;;  %v825_v23 = vadd.f32 %v824_v34, %v736_v28 }
 0x1ca   : > { %v1000_v15 = vadd.f32 %v999_v13, %v911_v12 }
 0x1cc   : > { %v1039_v18 = vmax.f32 %v1000_v15, 0.0 }
 0x1cd   : > { %v1158_v16 = vpop.f32.mrf.mxu0 }
 0x1ce   : > { %v1057_v44 = vpack.c.bf16 %v1039_v18, %v1038_v54  ;;  %v913_v20 = vpop.f32.mrf.mxu2 }
 0x1cf   : > { %v914_v25 = vadd.f32 %v913_v20, %v825_v23 }
 0x1d0   : > { %1197 = vmatmul.bf16.gmra.mxu0 %v1057_v44  ;;  %v826_v22 = vpop.f32.mrf.mxu1 }
 0x1d1   : > { %v1002_v21 = vpop.f32.mrf.mxu3  ;;  %v827_v26 = vadd.f32 %v826_v22, %v738_v24 }
 0x1d2   : > { %v1003_v0 = vadd.f32 %v1002_v21, %v914_v25 }
 0x1d4   : > { %v1040_v52 = vmax.f32 %v1003_v0, 0.0 }
 0x1d5   : > { %v1160_v61 = vpop.f32.mrf.mxu0 }
 0x1d6   : > { %v1574_v29 = vpack.c.bf16 %v1160_v61, %v1158_v16  ;;  %v915_v30 = vpop.f32.mrf.mxu2 }
 0x1d7   : > { %v916_v32 = vadd.f32 %v915_v30, %v827_v26 }
 0x1d8   : > { %1630 = vst [vmem:[%s2060_s11 + $0x28] sm:$0xff] %v1574_v29   ;;  %v829_v33 = vpop.f32.mrf.mxu1 }
 0x1d9   : > { %v1004_v2 = vpop.f32.mrf.mxu3  ;;  %v830_v39 = vadd.f32 %v829_v33, %v741_v45 }
 0x1da   : > { %v1005_v10 = vadd.f32 %v1004_v2, %v916_v32 }
 0x1dc   : > { %v1041_v35 = vmax.f32 %v1005_v10, 0.0 }
 0x1dd   : > { %v1163_v37 = vpop.f32.mrf.mxu0 }
 0x1de   : > { %v1058_v38 = vpack.c.bf16 %v1041_v35, %v1040_v52  ;;  %v918_v31 = vpop.f32.mrf.mxu2 }
 0x1df   : > { %v919_v42 = vadd.f32 %v918_v31, %v830_v39 }
 0x1e0   : > { %1202 = vmatmul.bf16.gmra.mxu0 %v1058_v38  ;;  %v831_v40 = vpop.f32.mrf.mxu1 }
 0x1e1   : > { %v1007_v63 = vpop.f32.mrf.mxu3  ;;  %v832_v43 = vadd.f32 %v831_v40, %v743_v41 }
 0x1e2   : > { %v1008_v47 = vadd.f32 %v1007_v63, %v919_v42 }
 0x1e4   : > { %v1042_v53 = vmax.f32 %v1008_v47, 0.0 }
 0x1e5   : > { %v1165_v17 = vpop.f32.mrf.mxu0 }
 0x1e6   : > { %v1579_v46 = vpack.c.bf16 %v1165_v17, %v1163_v37  ;;  %v920_v36 = vpop.f32.mrf.mxu2 }
 0x1e7   : > { %v921_v49 = vadd.f32 %v920_v36, %v832_v43 }
 0x1e8   : > { %1631 = vst [vmem:[%s2060_s11 + $0x30] sm:$0xff] %v1579_v46  }
 0x1e9   : > { %v1009_v50 = vpop.f32.mrf.mxu3 }
 0x1ea   : > { %v1010_v27 = vadd.f32 %v1009_v50, %v921_v49 }
 0x1ec   : > { %v1043_v51 = vmax.f32 %v1010_v27, 0.0 }
 0x1ed   : > { %v1168_v55 = vpop.f32.mrf.mxu0 }
 0x1ee   : > { %v1059_v56 = vpack.c.bf16 %v1043_v51, %v1042_v53 }
 0x1f0   : > { %1207 = vmatmul.bf16.gmra.mxu0 %v1059_v56 }
 0x1f5   : > { %v1170_v3 = vpop.f32.mrf.mxu0 }
 0x1f6   : > { %v1584_v8 = vpack.c.bf16 %v1170_v3, %v1168_v55 }
 0x1f8   : > { %1632 = vst [vmem:[%s2060_s11 + $0x38] sm:$0xff] %v1584_v8  }
 0x1fd   : > { %v1173_v1 = vpop.f32.mrf.mxu0 }
 0x205   : > { %v1175_v57 = vpop.f32.mrf.mxu0 }
 0x206   : > { %v1589_v58 = vpack.c.bf16 %v1175_v57, %v1173_v1 }
 0x208   : > { %1633 = vst [vmem:[%s2060_s11 + $0x40] sm:$0xff] %v1589_v58  }
 0x20d   : > { %v1178_v59 = vpop.f32.mrf.mxu0 }
 0x215   : > { %v1180_v11 = vpop.f32.mrf.mxu0 }
 0x216   : > { %v1594_v60 = vpack.c.bf16 %v1180_v11, %v1178_v59 }
 0x218   : > { %1634 = vst [vmem:[%s2060_s11 + $0x48] sm:$0xff] %v1594_v60  }
 0x21d   : > { %v1183_v62 = vpop.f32.mrf.mxu0 }
 0x225   : > { %v1185_v14 = vpop.f32.mrf.mxu0 }
 0x226   : > { %v1599_v4 = vpack.c.bf16 %v1185_v14, %v1183_v62 }
 0x228   : > { %1635 = vst [vmem:[%s2060_s11 + $0x50] sm:$0xff] %v1599_v4  }
 0x22d   : > { %v1188_v5 = vpop.f32.mrf.mxu0 }
 0x235   : > { %v1190_v6 = vpop.f32.mrf.mxu0 }
 0x236   : > { %v1604_v7 = vpack.c.bf16 %v1190_v6, %v1188_v5 }
 0x238   : > { %1636 = vst [vmem:[%s2060_s11 + $0x58] sm:$0xff] %v1604_v7  }
 0x23d   : > { %v1193_v19 = vpop.f32.mrf.mxu0 }
 0x245   : > { %v1195_v9 = vpop.f32.mrf.mxu0 }
 0x246   : > { %v1609_v48 = vpack.c.bf16 %v1195_v9, %v1193_v19 }
 0x248   : > { %1637 = vst [vmem:[%s2060_s11 + $0x60] sm:$0xff] %v1609_v48  }
 0x24d   : > { %v1198_v12 = vpop.f32.mrf.mxu0 }
 0x255   : > { %v1200_v13 = vpop.f32.mrf.mxu0 }
 0x256   : > { %v1614_v34 = vpack.c.bf16 %v1200_v13, %v1198_v12 }
 0x258   : > { %1638 = vst [vmem:[%s2060_s11 + $0x68] sm:$0xff] %v1614_v34  }
 0x25d   : > { %v1203_v15 = vpop.f32.mrf.mxu0 }
 0x265   : > { %v1205_v54 = vpop.f32.mrf.mxu0 }
 0x266   : > { %v1619_v18 = vpack.c.bf16 %v1205_v54, %v1203_v15 }
 0x268   : > { %1639 = vst [vmem:[%s2060_s11 + $0x70] sm:$0xff] %v1619_v18  }
 0x26d   : > { %v1208_v16 = vpop.f32.mrf.mxu0 }
 0x275   : > { %v1210_v44 = vpop.f32.mrf.mxu0 }
 0x276   : > { %v1624_v20 = vpack.c.bf16 %v1210_v44, %v1208_v16 }
 0x278   : > { %1640 = vst [vmem:[%s2060_s11 + $0x78] sm:$0xff] %v1624_v20  }
 0x279 PF: > { %s14_s15 = sadd.s32 1, %s1680_s15  }
 0x27a   : > { %p11_p4 = scmp.ge.s32.totalorder %s14_s15, 4  }
 0x27c   :  { %13 = sbr.rel (!%p11_p4) target bundleno = 1 (0x1), region = 66 }

</bundles_post_ra>
